<compile_context>
chip_gen: v7x
topology: tpu7x:2x2x1
jax: 0.10.0
libtpu: 0.0.40
codegen_flags: <defaults>
</compile_context>

<pallas_src>
import functools

import jax
import jax.numpy as jnp
from jax import lax
from jax.experimental import pallas as pl
from jax.experimental.pallas import tpu as pltpu


# ------------------------------ tile selection ------------------------------ #

def _pick_sublane_tile(dim, cap):
    """Largest tile <= cap that divides dim and is a multiple of 8, else the full dim."""
    if dim <= cap:
        return dim
    t = (cap // 8) * 8
    while t >= 8:
        if dim % t == 0:
            return t
        t -= 8
    return dim


def _pick_lane_tile(dim, cap):
    """Largest tile <= cap that divides dim and is a multiple of 128, else the full dim."""
    if dim <= cap:
        return dim
    t = (cap // 128) * 128
    while t >= 128:
        if dim % t == 0:
            return t
        t -= 128
    return dim


# ------------------------------ matmul kernels ------------------------------ #

def _matmul_kernel(x_ref, w_ref, o_ref, acc_ref, *, k_axis):
    @pl.when(pl.program_id(k_axis) == 0)
    def _():
        acc_ref[...] = jnp.zeros_like(acc_ref)

    acc_ref[...] += jnp.dot(x_ref[...], w_ref[...], preferred_element_type=jnp.float32)

    @pl.when(pl.program_id(k_axis) == pl.num_programs(k_axis) - 1)
    def _():
        o_ref[...] = acc_ref[...].astype(o_ref.dtype)


def _matmul_bias_kernel(x_ref, w_ref, b_ref, o_ref, acc_ref, *, k_axis):
    @pl.when(pl.program_id(k_axis) == 0)
    def _():
        acc_ref[...] = jnp.zeros_like(acc_ref)

    acc_ref[...] += jnp.dot(x_ref[...], w_ref[...], preferred_element_type=jnp.float32)

    @pl.when(pl.program_id(k_axis) == pl.num_programs(k_axis) - 1)
    def _():
        o_ref[...] = (acc_ref[...] + b_ref[...].astype(jnp.float32)).astype(o_ref.dtype)


def fused_qkv_proj(x2d, w3, *, tm_cap=256, tn_cap=256, tk_cap=512):
    """x2d: (M, C), w3: (3, C, C) stored as W^T per slice -> (3, M, C) = stacked q,k,v."""
    M, K = x2d.shape
    S, _, N = w3.shape
    tm = _pick_sublane_tile(M, tm_cap)
    tn = _pick_lane_tile(N, tn_cap)
    tk = _pick_lane_tile(K, tk_cap)
    grid = (S, M // tm, N // tn, K // tk)
    itemsize = x2d.dtype.itemsize
    cost = pl.CostEstimate(
        flops=2 * S * M * N * K,
        transcendentals=0,
        bytes_accessed=(M * K + S * K * N + S * M * N) * itemsize,
    )
    return pl.pallas_call(
        functools.partial(_matmul_kernel, k_axis=3),
        out_shape=jax.ShapeDtypeStruct((S, M, N), x2d.dtype),
        grid=grid,
        in_specs=[
            pl.BlockSpec((tm, tk), lambda s, i, j, k: (i, k)),
            pl.BlockSpec((None, tk, tn), lambda s, i, j, k: (s, k, j)),
        ],
        out_specs=pl.BlockSpec((None, tm, tn), lambda s, i, j, k: (s, i, j)),
        scratch_shapes=[pltpu.VMEM((tm, tn), jnp.float32)],
        compiler_params=pltpu.CompilerParams(
            dimension_semantics=("parallel", "parallel", "parallel", "arbitrary")),
        cost_estimate=cost,
    )(x2d, w3)


def linear_bias(x2d, w, b, *, tm_cap=256, tn_cap=256, tk_cap=512):
    """x2d: (M, Cin), w: (Cin, Cout) (= PyTorch W^T), b: (1, Cout) -> (M, Cout)."""
    M, K = x2d.shape
    _, N = w.shape
    tm = _pick_sublane_tile(M, tm_cap)
    tn = _pick_lane_tile(N, tn_cap)
    tk = _pick_lane_tile(K, tk_cap)
    grid = (M // tm, N // tn, K // tk)
    itemsize = x2d.dtype.itemsize
    cost = pl.CostEstimate(
        flops=2 * M * N * K,
        transcendentals=0,
        bytes_accessed=(M * K + K * N + M * N + N) * itemsize,
    )
    return pl.pallas_call(
        functools.partial(_matmul_bias_kernel, k_axis=2),
        out_shape=jax.ShapeDtypeStruct((M, N), x2d.dtype),
        grid=grid,
        in_specs=[
            pl.BlockSpec((tm, tk), lambda i, j, k: (i, k)),
            pl.BlockSpec((tk, tn), lambda i, j, k: (k, j)),
            pl.BlockSpec((1, tn), lambda i, j, k: (0, j)),
        ],
        out_specs=pl.BlockSpec((tm, tn), lambda i, j, k: (i, j)),
        scratch_shapes=[pltpu.VMEM((tm, tn), jnp.float32)],
        compiler_params=pltpu.CompilerParams(
            dimension_semantics=("parallel", "parallel", "arbitrary")),
        cost_estimate=cost,
    )(x2d, w, b)


# --------------------------- flash attention kernel -------------------------- #

def _flash_attn_kernel(q_ref, k_ref, v_ref, o_ref, m_ref, l_ref, acc_ref, *,
                       num_heads, head_dim, scale):
    ki = pl.program_id(2)

    @pl.when(ki == 0)
    def _():
        m_ref[...] = jnp.full_like(m_ref, -jnp.inf)
        l_ref[...] = jnp.zeros_like(l_ref)
        acc_ref[...] = jnp.zeros_like(acc_ref)

    q = q_ref[...]            # (tq,  C)  lane-dense load
    k = k_ref[...]            # (tkv, C)
    v = v_ref[...]            # (tkv, C)
    tq = q.shape[0]
    D = head_dim
    scale_c = jnp.asarray(scale, q.dtype)

    for h in range(num_heads):                       # static unroll over heads
        lo, hi = h * D, (h + 1) * D
        q_h = q[:, lo:hi] * scale_c                  # fold softmax scale into Q (tq, D)
        k_h = k[:, lo:hi]                            # (tkv, D)
        v_h = v[:, lo:hi]
        # q_h @ k_h^T without materializing the transpose (contract last dims).
        s = lax.dot_general(q_h, k_h, (((1,), (1,)), ((), ())),
                            preferred_element_type=jnp.float32)        # (tq, tkv)

        m_prev = m_ref[:, lo:lo + 1]                 # (tq, 1)
        l_prev = l_ref[:, lo:lo + 1]
        m_new = jnp.maximum(m_prev, jnp.max(s, axis=-1, keepdims=True))
        alpha = jnp.exp(m_prev - m_new)              # (tq, 1)
        p = jnp.exp(s - m_new)                       # (tq, tkv) f32
        l_new = alpha * l_prev + jnp.sum(p, axis=-1, keepdims=True)

        pv = lax.dot_general(p.astype(v_h.dtype), v_h, (((1,), (0,)), ((), ())),
                             preferred_element_type=jnp.float32)        # (tq, D)
        acc_ref[:, lo:hi] = alpha * acc_ref[:, lo:hi] + pv
        # running max / denominator broadcast over the head's D lanes so the
        # final normalization + store is a single lane-dense op.
        m_ref[:, lo:hi] = jnp.broadcast_to(m_new, (tq, D))
        l_ref[:, lo:hi] = jnp.broadcast_to(l_new, (tq, D))

    @pl.when(ki == pl.num_programs(2) - 1)
    def _():
        inv_l = pl.reciprocal(l_ref[...], approx=True)
        o_ref[...] = (acc_ref[...] * inv_l).astype(o_ref.dtype)


def flash_attention(qkv, *, num_heads, scale, tq_cap=128, tkv_cap=256):
    """qkv: (3, B, L, C) with q/k/v stacked on axis 0 -> (B, L, C) attention output."""
    _, B, L, C = qkv.shape
    D = C // num_heads
    tq = _pick_sublane_tile(L, tq_cap)
    tkv = _pick_sublane_tile(L, tkv_cap)
    grid = (B, L // tq, L // tkv)
    itemsize = qkv.dtype.itemsize
    cost = pl.CostEstimate(
        flops=4 * B * L * L * C,
        transcendentals=B * num_heads * L * L,
        bytes_accessed=4 * B * L * C * itemsize,
    )
    kernel = functools.partial(_flash_attn_kernel, num_heads=num_heads,
                               head_dim=D, scale=scale)
    q_spec = pl.BlockSpec((None, None, tq, C), lambda b, qi, ki: (0, b, qi, 0))
    k_spec = pl.BlockSpec((None, None, tkv, C), lambda b, qi, ki: (1, b, ki, 0))
    v_spec = pl.BlockSpec((None, None, tkv, C), lambda b, qi, ki: (2, b, ki, 0))
    o_spec = pl.BlockSpec((None, tq, C), lambda b, qi, ki: (b, qi, 0))
    return pl.pallas_call(
        kernel,
        out_shape=jax.ShapeDtypeStruct((B, L, C), qkv.dtype),
        grid=grid,
        in_specs=[q_spec, k_spec, v_spec],
        out_specs=o_spec,
        scratch_shapes=[
            pltpu.VMEM((tq, C), jnp.float32),   # running max (broadcast per head)
            pltpu.VMEM((tq, C), jnp.float32),   # running denominator (broadcast per head)
            pltpu.VMEM((tq, C), jnp.float32),   # output accumulator
        ],
        compiler_params=pltpu.CompilerParams(
            dimension_semantics=("parallel", "parallel", "arbitrary")),
        cost_estimate=cost,
    )(qkv, qkv, qkv)


# ------------------------------ Module wrapper ------------------------------ #

def init_params(key, dim, num_heads, dtype=jnp.float32):
    """Deterministic synthetic params matching JointAttention(dim, num_heads,
    qkv_bias=False, qk_norm=None, rope_mode='none').  QKV weights are stored fused
    as (3, Cin, Cout) (each slice is the PyTorch W^T)."""
    names = ["qx", "kx", "vx", "qc", "kc", "vc", "proj_x", "proj_c"]
    keys = jax.random.split(key, len(names))
    w = {n: (jax.random.normal(kk, (dim, dim), dtype) * 0.02) for n, kk in zip(names, keys)}
    params = {
        "w_qkv_x": jnp.stack([w["qx"], w["kx"], w["vx"]], axis=0),   # (3, C, C)
        "w_qkv_c": jnp.stack([w["qc"], w["kc"], w["vc"]], axis=0),   # (3, C, C)
        "w_proj_x": w["proj_x"],
        "w_proj_c": w["proj_c"],
    }
    kb1, kb2 = jax.random.split(jax.random.fold_in(key, 123))
    params["b_proj_x"] = jax.random.normal(kb1, (1, dim), dtype) * 0.02
    params["b_proj_c"] = jax.random.normal(kb2, (1, dim), dtype) * 0.02
    return params


def joint_attention_forward(x, context, params, num_heads):
    """JointAttention forward with defaults: qkv_bias=False, qk_norm=None, rope_mode='none',
    dropout=0, x_mask=None, context_mask=None, extras=0.
    Returns (x_out, context_out) of shapes (B, Lx, C), (B, Lc, C)."""
    B, Lx, C = x.shape
    _, Lc, _ = context.shape
    H = num_heads
    D = C // H
    scale = D ** (-0.5)

    # Fused QKV projections (qkv bias is zero -> skipped).  Output is (3, rows, C).
    qkv_c = fused_qkv_proj(context.reshape(B * Lc, C), params["w_qkv_c"])
    qkv_x = fused_qkv_proj(x.reshape(B * Lx, C), params["w_qkv_x"])

    # Single concat along the joint sequence (context tokens first, as in the reference).
    qkv = jnp.concatenate(
        [qkv_c.reshape(3, B, Lc, C), qkv_x.reshape(3, B, Lx, C)], axis=2)   # (3, B, L, C)

    # Flash attention writes directly in (B, L, C) layout -> no head transpose afterwards.
    o = flash_attention(qkv, num_heads=H, scale=scale)                      # (B, L, C)

    context_out = o[:, :Lc, :]
    x_out = o[:, Lc:, :]

    x_out = linear_bias(x_out.reshape(B * Lx, C),
                        params["w_proj_x"], params["b_proj_x"]).reshape(B, Lx, C)
    context_out = linear_bias(context_out.reshape(B * Lc, C),
                              params["w_proj_c"], params["b_proj_c"]).reshape(B, Lc, C)
    return x_out, context_out


# ------------------------------ pure-JAX reference --------------------------- #

def joint_attention_reference(x, context, params, num_heads):
    B, Lx, C = x.shape
    _, Lc, _ = context.shape
    H = num_heads
    D = C // H
    scale = D ** (-0.5)

    qc, kc, vc = jnp.einsum("blc,scd->sbld", context, params["w_qkv_c"])
    qx, kx, vx = jnp.einsum("blc,scd->sbld", x, params["w_qkv_x"])
    q = jnp.concatenate([qc, qx], axis=1)
    k = jnp.concatenate([kc, kx], axis=1)
    v = jnp.concatenate([vc, vx], axis=1)

    def heads(t):
        return t.reshape(B, Lc + Lx, H, D).transpose(0, 2, 1, 3)

    q, k, v = heads(q), heads(k), heads(v)
    s = jnp.einsum("bhqd,bhkd->bhqk", q, k) * scale
    p = jax.nn.softmax(s, axis=-1)
    o = jnp.einsum("bhqk,bhkd->bhqd", p, v).transpose(0, 2, 1, 3).reshape(B, Lc + Lx, C)
    c_out = o[:, :Lc] @ params["w_proj_c"] + params["b_proj_c"]
    x_out = o[:, Lc:] @ params["w_proj_x"] + params["b_proj_x"]
    return x_out, c_out


# ---------------------------------- main ------------------------------------ #

if __name__ == "__main__":
    key = jax.random.PRNGKey(0)
    k_x, k_c, k_p = jax.random.split(key, 3)

    B, Lx, Lc, C, H = 2, 16, 8, 32, 4

    x = jax.random.normal(k_x, (B, Lx, C), jnp.float32)
    context = jax.random.normal(k_c, (B, Lc, C), jnp.float32)
    params = init_params(k_p, C, H)

    fwd = jax.jit(functools.partial(joint_attention_forward, num_heads=H))
    x_out, c_out = fwd(x, context, params)
    jax.block_until_ready((x_out, c_out))

    assert x_out.shape == (B, Lx, C) and c_out.shape == (B, Lc, C)

    x_ref, c_ref = joint_attention_reference(x, context, params, H)
    assert jnp.allclose(x_out, x_ref, atol=2e-2, rtol=2e-2)
    assert jnp.allclose(c_out, c_ref, atol=2e-2, rtol=2e-2)

    print("KERNEL_OK")
</pallas_src>

<mosaic_0001>
module attributes {stable_mosaic.version = 11 : i64} {
  func.func @_matmul_kernel(%arg0: i32, %arg1: i32, %arg2: i32, %arg3: i32, %arg4: memref<32x32xf32, #tpu.memory_space<vmem>>, %arg5: memref<1x32x32xf32, #tpu.memory_space<vmem>>, %arg6: memref<1x32x32xf32, #tpu.memory_space<vmem>>, %arg7: memref<32x32xf32, #tpu.memory_space<vmem>>) attributes {dimension_semantics = [#tpu.dimension_semantics<parallel>, #tpu.dimension_semantics<parallel>, #tpu.dimension_semantics<parallel>, #tpu.dimension_semantics<arbitrary>], iteration_bounds = array<i64: 3, 1, 1, 1>, scalar_prefetch = 0 : i64, scratch_operands = 1 : i64, tpu.core_type = #tpu.core_type<tc>, window_params = [{transform_indices = @transform_0, window_bounds = array<i64: 32, 32>}, {transform_indices = @transform_1, window_bounds = array<i64: 1, 32, 32>}, {transform_indices = @transform_2, window_bounds = array<i64: 1, 32, 32>}]} {
    %c0_i32 = arith.constant 0 : i32
    %0 = arith.cmpi eq, %arg3, %c0_i32 : i32
    %1 = arith.extui %0 : i1 to i32
    %c0_i32_0 = arith.constant 0 : i32
    %2 = arith.cmpi ne, %1, %c0_i32_0 : i32
    scf.if %2 {
      %cst_11 = arith.constant 0.000000e+00 : f32
      %13 = vector.broadcast %cst_11 : f32 to vector<32x32xf32>
      %c0_12 = arith.constant 0 : index
      %c0_13 = arith.constant 0 : index
      %14 = vector.load %arg7[%c0_12, %c0_13] : memref<32x32xf32, #tpu.memory_space<vmem>>, vector<32x32xf32>
      tpu.vector_store %arg7[%c0_12, %c0_13], %13 {strides = array<i32>} : memref<32x32xf32, #tpu.memory_space<vmem>>, vector<32x32xf32>,
    } else {
    }
    %c0 = arith.constant 0 : index
    %c0_1 = arith.constant 0 : index
    %3 = vector.load %arg7[%c0, %c0_1] : memref<32x32xf32, #tpu.memory_space<vmem>>, vector<32x32xf32>
    %c0_2 = arith.constant 0 : index
    %c0_3 = arith.constant 0 : index
    %4 = vector.load %arg4[%c0_2, %c0_3] : memref<32x32xf32, #tpu.memory_space<vmem>>, vector<32x32xf32>
    %c0_4 = arith.constant 0 : index
    %c0_5 = arith.constant 0 : index
    %c0_6 = arith.constant 0 : index
    %5 = vector.load %arg5[%c0_4, %c0_5, %c0_6] : memref<1x32x32xf32, #tpu.memory_space<vmem>>, vector<1x32x32xf32>
    %6 = vector.shape_cast %5 : vector<1x32x32xf32> to vector<32x32xf32>
    %cst = arith.constant dense<0.000000e+00> : vector<32x32xf32>
    %7 = tpu.matmul %4, %6, %cst {dimension_numbers = #tpu.dot_dimension_numbers<[1], [0], [0], [1], [0, 0, 1, 1], [], []>} : vector<32x32xf32>, vector<32x32xf32>, vector<32x32xf32> -> vector<32x32xf32>
    %8 = arith.addf %3, %7 : vector<32x32xf32>
    %c0_7 = arith.constant 0 : index
    %c0_8 = arith.constant 0 : index
    %9 = vector.load %arg7[%c0_7, %c0_8] : memref<32x32xf32, #tpu.memory_space<vmem>>, vector<32x32xf32>
    tpu.vector_store %arg7[%c0_7, %c0_8], %8 {strides = array<i32>} : memref<32x32xf32, #tpu.memory_space<vmem>>, vector<32x32xf32>,
    %c0_i32_9 = arith.constant 0 : i32
    %10 = arith.cmpi eq, %arg3, %c0_i32_9 : i32
    %11 = arith.extui %10 : i1 to i32
    %c0_i32_10 = arith.constant 0 : i32
    %12 = arith.cmpi ne, %11, %c0_i32_10 : i32
    scf.if %12 {
      %c0_11 = arith.constant 0 : index
      %c0_12 = arith.constant 0 : index
      %13 = vector.load %arg7[%c0_11, %c0_12] : memref<32x32xf32, #tpu.memory_space<vmem>>, vector<32x32xf32>
      %c0_13 = arith.constant 0 : index
      %c0_14 = arith.constant 0 : index
      %c0_15 = arith.constant 0 : index
      %14 = vector.load %arg6[%c0_13, %c0_14, %c0_15] : memref<1x32x32xf32, #tpu.memory_space<vmem>>, vector<1x32x32xf32>
      %15 = vector.shape_cast %14 : vector<1x32x32xf32> to vector<32x32xf32>
      %16 = vector.shape_cast %13 : vector<32x32xf32> to vector<1x32x32xf32>
      tpu.vector_store %arg6[%c0_13, %c0_14, %c0_15], %16 {strides = array<i32>} : memref<1x32x32xf32, #tpu.memory_space<vmem>>, vector<1x32x32xf32>,
    } else {
    }
    return
  }
  func.func @transform_0(%arg0: i32, %arg1: i32, %arg2: i32, %arg3: i32) -> (i32, i32) {
    %c0_i32 = arith.constant 0 : i32
    return %arg1, %arg3 : i32, i32
  }
  func.func @transform_1(%arg0: i32, %arg1: i32, %arg2: i32, %arg3: i32) -> (i32, i32, i32) {
    %c0_i32 = arith.constant 0 : i32
    return %arg0, %arg3, %arg2 : i32, i32, i32
  }
  func.func @transform_2(%arg0: i32, %arg1: i32, %arg2: i32, %arg3: i32) -> (i32, i32, i32) {
    %c0_i32 = arith.constant 0 : i32
    return %arg0, %arg1, %arg2 : i32, i32, i32
  }
}

module attributes {stable_mosaic.version = 11 : i64} {
  func.func @_matmul_kernel(%arg0: i32, %arg1: i32, %arg2: i32, %arg3: i32, %arg4: memref<16x32xf32, #tpu.memory_space<vmem>>, %arg5: memref<1x32x32xf32, #tpu.memory_space<vmem>>, %arg6: memref<1x16x32xf32, #tpu.memory_space<vmem>>, %arg7: memref<16x32xf32, #tpu.memory_space<vmem>>) attributes {dimension_semantics = [#tpu.dimension_semantics<parallel>, #tpu.dimension_semantics<parallel>, #tpu.dimension_semantics<parallel>, #tpu.dimension_semantics<arbitrary>], iteration_bounds = array<i64: 3, 1, 1, 1>, scalar_prefetch = 0 : i64, scratch_operands = 1 : i64, tpu.core_type = #tpu.core_type<tc>, window_params = [{transform_indices = @transform_0, window_bounds = array<i64: 16, 32>}, {transform_indices = @transform_1, window_bounds = array<i64: 1, 32, 32>}, {transform_indices = @transform_2, window_bounds = array<i64: 1, 16, 32>}]} {
    %c0_i32 = arith.constant 0 : i32
    %0 = arith.cmpi eq, %arg3, %c0_i32 : i32
    %1 = arith.extui %0 : i1 to i32
    %c0_i32_0 = arith.constant 0 : i32
    %2 = arith.cmpi ne, %1, %c0_i32_0 : i32
    scf.if %2 {
      %cst_11 = arith.constant 0.000000e+00 : f32
      %13 = vector.broadcast %cst_11 : f32 to vector<16x32xf32>
      %c0_12 = arith.constant 0 : index
      %c0_13 = arith.constant 0 : index
      %14 = vector.load %arg7[%c0_12, %c0_13] : memref<16x32xf32, #tpu.memory_space<vmem>>, vector<16x32xf32>
      tpu.vector_store %arg7[%c0_12, %c0_13], %13 {strides = array<i32>} : memref<16x32xf32, #tpu.memory_space<vmem>>, vector<16x32xf32>,
    } else {
    }
    %c0 = arith.constant 0 : index
    %c0_1 = arith.constant 0 : index
    %3 = vector.load %arg7[%c0, %c0_1] : memref<16x32xf32, #tpu.memory_space<vmem>>, vector<16x32xf32>
    %c0_2 = arith.constant 0 : index
    %c0_3 = arith.constant 0 : index
    %4 = vector.load %arg4[%c0_2, %c0_3] : memref<16x32xf32, #tpu.memory_space<vmem>>, vector<16x32xf32>
    %c0_4 = arith.constant 0 : index
    %c0_5 = arith.constant 0 : index
    %c0_6 = arith.constant 0 : index
    %5 = vector.load %arg5[%c0_4, %c0_5, %c0_6] : memref<1x32x32xf32, #tpu.memory_space<vmem>>, vector<1x32x32xf32>
    %6 = vector.shape_cast %5 : vector<1x32x32xf32> to vector<32x32xf32>
    %cst = arith.constant dense<0.000000e+00> : vector<16x32xf32>
    %7 = tpu.matmul %4, %6, %cst {dimension_numbers = #tpu.dot_dimension_numbers<[1], [0], [0], [1], [0, 0, 1, 1], [], []>} : vector<16x32xf32>, vector<32x32xf32>, vector<16x32xf32> -> vector<16x32xf32>
    %8 = arith.addf %3, %7 : vector<16x32xf32>
    %c0_7 = arith.constant 0 : index
    %c0_8 = arith.constant 0 : index
    %9 = vector.load %arg7[%c0_7, %c0_8] : memref<16x32xf32, #tpu.memory_space<vmem>>, vector<16x32xf32>
    tpu.vector_store %arg7[%c0_7, %c0_8], %8 {strides = array<i32>} : memref<16x32xf32, #tpu.memory_space<vmem>>, vector<16x32xf32>,
    %c0_i32_9 = arith.constant 0 : i32
    %10 = arith.cmpi eq, %arg3, %c0_i32_9 : i32
    %11 = arith.extui %10 : i1 to i32
    %c0_i32_10 = arith.constant 0 : i32
    %12 = arith.cmpi ne, %11, %c0_i32_10 : i32
    scf.if %12 {
      %c0_11 = arith.constant 0 : index
      %c0_12 = arith.constant 0 : index
      %13 = vector.load %arg7[%c0_11, %c0_12] : memref<16x32xf32, #tpu.memory_space<vmem>>, vector<16x32xf32>
      %c0_13 = arith.constant 0 : index
      %c0_14 = arith.constant 0 : index
      %c0_15 = arith.constant 0 : index
      %14 = vector.load %arg6[%c0_13, %c0_14, %c0_15] : memref<1x16x32xf32, #tpu.memory_space<vmem>>, vector<1x16x32xf32>
      %15 = vector.shape_cast %14 : vector<1x16x32xf32> to vector<16x32xf32>
      %16 = vector.shape_cast %13 : vector<16x32xf32> to vector<1x16x32xf32>
      tpu.vector_store %arg6[%c0_13, %c0_14, %c0_15], %16 {strides = array<i32>} : memref<1x16x32xf32, #tpu.memory_space<vmem>>, vector<1x16x32xf32>,
    } else {
    }
    return
  }
  func.func @transform_0(%arg0: i32, %arg1: i32, %arg2: i32, %arg3: i32) -> (i32, i32) {
    %c0_i32 = arith.constant 0 : i32
    return %arg1, %arg3 : i32, i32
  }
  func.func @transform_1(%arg0: i32, %arg1: i32, %arg2: i32, %arg3: i32) -> (i32, i32, i32) {
    %c0_i32 = arith.constant 0 : i32
    return %arg0, %arg3, %arg2 : i32, i32, i32
  }
  func.func @transform_2(%arg0: i32, %arg1: i32, %arg2: i32, %arg3: i32) -> (i32, i32, i32) {
    %c0_i32 = arith.constant 0 : i32
    return %arg0, %arg1, %arg2 : i32, i32, i32
  }
}

module attributes {stable_mosaic.version = 11 : i64} {
  func.func @_flash_attn_kernel(%arg0: i32, %arg1: i32, %arg2: i32, %arg3: memref<1x1x24x32xf32, #tpu.memory_space<vmem>>, %arg4: memref<1x1x24x32xf32, #tpu.memory_space<vmem>>, %arg5: memref<1x1x24x32xf32, #tpu.memory_space<vmem>>, %arg6: memref<1x24x32xf32, #tpu.memory_space<vmem>>, %arg7: memref<24x32xf32, #tpu.memory_space<vmem>>, %arg8: memref<24x32xf32, #tpu.memory_space<vmem>>, %arg9: memref<24x32xf32, #tpu.memory_space<vmem>>) attributes {dimension_semantics = [#tpu.dimension_semantics<parallel>, #tpu.dimension_semantics<parallel>, #tpu.dimension_semantics<arbitrary>], iteration_bounds = array<i64: 2, 1, 1>, scalar_prefetch = 0 : i64, scratch_operands = 3 : i64, tpu.core_type = #tpu.core_type<tc>, window_params = [{transform_indices = @transform_0, window_bounds = array<i64: 1, 1, 24, 32>}, {transform_indices = @transform_1, window_bounds = array<i64: 1, 1, 24, 32>}, {transform_indices = @transform_2, window_bounds = array<i64: 1, 1, 24, 32>}, {transform_indices = @transform_3, window_bounds = array<i64: 1, 24, 32>}]} {
    %c0_i32 = arith.constant 0 : i32
    %0 = arith.cmpi eq, %arg2, %c0_i32 : i32
    %1 = arith.extui %0 : i1 to i32
    %c0_i32_0 = arith.constant 0 : i32
    %2 = arith.cmpi ne, %1, %c0_i32_0 : i32
    scf.if %2 {
      %cst_78 = arith.constant 0xFF800000 : f32
      %140 = vector.broadcast %cst_78 : f32 to vector<24x32xf32>
      %c0_79 = arith.constant 0 : index
      %c0_80 = arith.constant 0 : index
      %141 = vector.load %arg7[%c0_79, %c0_80] : memref<24x32xf32, #tpu.memory_space<vmem>>, vector<24x32xf32>
      tpu.vector_store %arg7[%c0_79, %c0_80], %140 {strides = array<i32>} : memref<24x32xf32, #tpu.memory_space<vmem>>, vector<24x32xf32>,
      %cst_81 = arith.constant 0.000000e+00 : f32
      %142 = vector.broadcast %cst_81 : f32 to vector<24x32xf32>
      %c0_82 = arith.constant 0 : index
      %c0_83 = arith.constant 0 : index
      %143 = vector.load %arg8[%c0_82, %c0_83] : memref<24x32xf32, #tpu.memory_space<vmem>>, vector<24x32xf32>
      tpu.vector_store %arg8[%c0_82, %c0_83], %142 {strides = array<i32>} : memref<24x32xf32, #tpu.memory_space<vmem>>, vector<24x32xf32>,
      %cst_84 = arith.constant 0.000000e+00 : f32
      %144 = vector.broadcast %cst_84 : f32 to vector<24x32xf32>
      %c0_85 = arith.constant 0 : index
      %c0_86 = arith.constant 0 : index
      %145 = vector.load %arg9[%c0_85, %c0_86] : memref<24x32xf32, #tpu.memory_space<vmem>>, vector<24x32xf32>
      tpu.vector_store %arg9[%c0_85, %c0_86], %144 {strides = array<i32>} : memref<24x32xf32, #tpu.memory_space<vmem>>, vector<24x32xf32>,
    } else {
    }
    %c0 = arith.constant 0 : index
    %c0_1 = arith.constant 0 : index
    %c0_2 = arith.constant 0 : index
    %c0_3 = arith.constant 0 : index
    %3 = vector.load %arg3[%c0, %c0_1, %c0_2, %c0_3] : memref<1x1x24x32xf32, #tpu.memory_space<vmem>>, vector<1x1x24x32xf32>
    %4 = vector.shape_cast %3 : vector<1x1x24x32xf32> to vector<24x32xf32>
    %c0_4 = arith.constant 0 : index
    %c0_5 = arith.constant 0 : index
    %c0_6 = arith.constant 0 : index
    %c0_7 = arith.constant 0 : index
    %5 = vector.load %arg4[%c0_4, %c0_5, %c0_6, %c0_7] : memref<1x1x24x32xf32, #tpu.memory_space<vmem>>, vector<1x1x24x32xf32>
    %6 = vector.shape_cast %5 : vector<1x1x24x32xf32> to vector<24x32xf32>
    %c0_8 = arith.constant 0 : index
    %c0_9 = arith.constant 0 : index
    %c0_10 = arith.constant 0 : index
    %c0_11 = arith.constant 0 : index
    %7 = vector.load %arg5[%c0_8, %c0_9, %c0_10, %c0_11] : memref<1x1x24x32xf32, #tpu.memory_space<vmem>>, vector<1x1x24x32xf32>
    %8 = vector.shape_cast %7 : vector<1x1x24x32xf32> to vector<24x32xf32>
    %9 = vector.extract_strided_slice %4 {offsets = [0, 0], sizes = [24, 8], strides = [1, 1]} : vector<24x32xf32> to vector<24x8xf32>
    %cst = arith.constant 0.353553385 : f32
    %10 = vector.broadcast %cst : f32 to vector<24x8xf32>
    %11 = arith.mulf %9, %10 : vector<24x8xf32>
    %12 = vector.extract_strided_slice %6 {offsets = [0, 0], sizes = [24, 8], strides = [1, 1]} : vector<24x32xf32> to vector<24x8xf32>
    %13 = vector.extract_strided_slice %8 {offsets = [0, 0], sizes = [24, 8], strides = [1, 1]} : vector<24x32xf32> to vector<24x8xf32>
    %cst_12 = arith.constant dense<0.000000e+00> : vector<24x24xf32>
    %14 = tpu.matmul %11, %12, %cst_12 {dimension_numbers = #tpu.dot_dimension_numbers<[1], [1], [0], [0], [0, 0, 1, 0], [], []>} : vector<24x8xf32>, vector<24x8xf32>, vector<24x24xf32> -> vector<24x24xf32>
    %c0_13 = arith.constant 0 : index
    %c0_14 = arith.constant 0 : index
    %15 = vector.load %arg7[%c0_13, %c0_14] : memref<24x32xf32, #tpu.memory_space<vmem>>, vector<24x1xf32>
    %c0_15 = arith.constant 0 : index
    %c0_16 = arith.constant 0 : index
    %16 = vector.load %arg8[%c0_15, %c0_16] : memref<24x32xf32, #tpu.memory_space<vmem>>, vector<24x1xf32>
    %cst_17 = arith.constant dense<0xFF800000> : vector<24xf32>
    %17 = vector.multi_reduction <maximumf>, %14, %cst_17 [1] : vector<24x24xf32> to vector<24xf32>
    %18 = vector.shape_cast %17 : vector<24xf32> to vector<24x1xf32>
    %19 = arith.maximumf %15, %18 : vector<24x1xf32>
    %20 = arith.subf %15, %19 : vector<24x1xf32>
    %21 = math.exp %20 : vector<24x1xf32>
    %22 = vector.broadcast %19 : vector<24x1xf32> to vector<24x24xf32>
    %23 = arith.subf %14, %22 : vector<24x24xf32>
    %24 = math.exp %23 : vector<24x24xf32>
    %25 = arith.mulf %21, %16 : vector<24x1xf32>
    %cst_18 = arith.constant dense<0.000000e+00> : vector<24xf32>
    %26 = vector.multi_reduction <add>, %24, %cst_18 [1] : vector<24x24xf32> to vector<24xf32>
    %27 = vector.shape_cast %26 : vector<24xf32> to vector<24x1xf32>
    %28 = arith.addf %25, %27 : vector<24x1xf32>
    %cst_19 = arith.constant dense<0.000000e+00> : vector<24x8xf32>
    %29 = tpu.matmul %24, %13, %cst_19 {dimension_numbers = #tpu.dot_dimension_numbers<[1], [0], [0], [1], [0, 0, 1, 1], [], []>} : vector<24x24xf32>, vector<24x8xf32>, vector<24x8xf32> -> vector<24x8xf32>
    %c0_20 = arith.constant 0 : index
    %c0_21 = arith.constant 0 : index
    %30 = vector.load %arg9[%c0_20, %c0_21] : memref<24x32xf32, #tpu.memory_space<vmem>>, vector<24x8xf32>
    %31 = vector.broadcast %21 : vector<24x1xf32> to vector<24x8xf32>
    %32 = arith.mulf %31, %30 : vector<24x8xf32>
    %33 = arith.addf %32, %29 : vector<24x8xf32>
    %c0_22 = arith.constant 0 : index
    %c0_23 = arith.constant 0 : index
    %34 = vector.load %arg9[%c0_22, %c0_23] : memref<24x32xf32, #tpu.memory_space<vmem>>, vector<24x8xf32>
    tpu.vector_store %arg9[%c0_22, %c0_23], %33 {strides = array<i32>} : memref<24x32xf32, #tpu.memory_space<vmem>>, vector<24x8xf32>,
    %35 = vector.shape_cast %19 : vector<24x1xf32> to vector<24x1xf32>
    %36 = vector.broadcast %35 : vector<24x1xf32> to vector<24x8xf32>
    %c0_24 = arith.constant 0 : index
    %c0_25 = arith.constant 0 : index
    %37 = vector.load %arg7[%c0_24, %c0_25] : memref<24x32xf32, #tpu.memory_space<vmem>>, vector<24x8xf32>
    tpu.vector_store %arg7[%c0_24, %c0_25], %36 {strides = array<i32>} : memref<24x32xf32, #tpu.memory_space<vmem>>, vector<24x8xf32>,
    %38 = vector.shape_cast %28 : vector<24x1xf32> to vector<24x1xf32>
    %39 = vector.broadcast %38 : vector<24x1xf32> to vector<24x8xf32>
    %c0_26 = arith.constant 0 : index
    %c0_27 = arith.constant 0 : index
    %40 = vector.load %arg8[%c0_26, %c0_27] : memref<24x32xf32, #tpu.memory_space<vmem>>, vector<24x8xf32>
    tpu.vector_store %arg8[%c0_26, %c0_27], %39 {strides = array<i32>} : memref<24x32xf32, #tpu.memory_space<vmem>>, vector<24x8xf32>,
    %41 = vector.extract_strided_slice %4 {offsets = [0, 8], sizes = [24, 8], strides = [1, 1]} : vector<24x32xf32> to vector<24x8xf32>
    %cst_28 = arith.constant 0.353553385 : f32
    %42 = vector.broadcast %cst_28 : f32 to vector<24x8xf32>
    %43 = arith.mulf %41, %42 : vector<24x8xf32>
    %44 = vector.extract_strided_slice %6 {offsets = [0, 8], sizes = [24, 8], strides = [1, 1]} : vector<24x32xf32> to vector<24x8xf32>
    %45 = vector.extract_strided_slice %8 {offsets = [0, 8], sizes = [24, 8], strides = [1, 1]} : vector<24x32xf32> to vector<24x8xf32>
    %cst_29 = arith.constant dense<0.000000e+00> : vector<24x24xf32>
    %46 = tpu.matmul %43, %44, %cst_29 {dimension_numbers = #tpu.dot_dimension_numbers<[1], [1], [0], [0], [0, 0, 1, 0], [], []>} : vector<24x8xf32>, vector<24x8xf32>, vector<24x24xf32> -> vector<24x24xf32>
    %c0_30 = arith.constant 0 : index
    %c8 = arith.constant 8 : index
    %47 = vector.load %arg7[%c0_30, %c8] : memref<24x32xf32, #tpu.memory_space<vmem>>, vector<24x1xf32>
    %c0_31 = arith.constant 0 : index
    %c8_32 = arith.constant 8 : index
    %48 = vector.load %arg8[%c0_31, %c8_32] : memref<24x32xf32, #tpu.memory_space<vmem>>, vector<24x1xf32>
    %cst_33 = arith.constant dense<0xFF800000> : vector<24xf32>
    %49 = vector.multi_reduction <maximumf>, %46, %cst_33 [1] : vector<24x24xf32> to vector<24xf32>
    %50 = vector.shape_cast %49 : vector<24xf32> to vector<24x1xf32>
    %51 = arith.maximumf %47, %50 : vector<24x1xf32>
    %52 = arith.subf %47, %51 : vector<24x1xf32>
    %53 = math.exp %52 : vector<24x1xf32>
    %54 = vector.broadcast %51 : vector<24x1xf32> to vector<24x24xf32>
    %55 = arith.subf %46, %54 : vector<24x24xf32>
    %56 = math.exp %55 : vector<24x24xf32>
    %57 = arith.mulf %53, %48 : vector<24x1xf32>
    %cst_34 = arith.constant dense<0.000000e+00> : vector<24xf32>
    %58 = vector.multi_reduction <add>, %56, %cst_34 [1] : vector<24x24xf32> to vector<24xf32>
    %59 = vector.shape_cast %58 : vector<24xf32> to vector<24x1xf32>
    %60 = arith.addf %57, %59 : vector<24x1xf32>
    %cst_35 = arith.constant dense<0.000000e+00> : vector<24x8xf32>
    %61 = tpu.matmul %56, %45, %cst_35 {dimension_numbers = #tpu.dot_dimension_numbers<[1], [0], [0], [1], [0, 0, 1, 1], [], []>} : vector<24x24xf32>, vector<24x8xf32>, vector<24x8xf32> -> vector<24x8xf32>
    %c0_36 = arith.constant 0 : index
    %c8_37 = arith.constant 8 : index
    %62 = vector.load %arg9[%c0_36, %c8_37] : memref<24x32xf32, #tpu.memory_space<vmem>>, vector<24x8xf32>
    %63 = vector.broadcast %53 : vector<24x1xf32> to vector<24x8xf32>
    %64 = arith.mulf %63, %62 : vector<24x8xf32>
    %65 = arith.addf %64, %61 : vector<24x8xf32>
    %c0_38 = arith.constant 0 : index
    %c8_39 = arith.constant 8 : index
    %66 = vector.load %arg9[%c0_38, %c8_39] : memref<24x32xf32, #tpu.memory_space<vmem>>, vector<24x8xf32>
    tpu.vector_store %arg9[%c0_38, %c8_39], %65 {strides = array<i32>} : memref<24x32xf32, #tpu.memory_space<vmem>>, vector<24x8xf32>,
    %67 = vector.shape_cast %51 : vector<24x1xf32> to vector<24x1xf32>
    %68 = vector.broadcast %67 : vector<24x1xf32> to vector<24x8xf32>
    %c0_40 = arith.constant 0 : index
    %c8_41 = arith.constant 8 : index
    %69 = vector.load %arg7[%c0_40, %c8_41] : memref<24x32xf32, #tpu.memory_space<vmem>>, vector<24x8xf32>
    tpu.vector_store %arg7[%c0_40, %c8_41], %68 {strides = array<i32>} : memref<24x32xf32, #tpu.memory_space<vmem>>, vector<24x8xf32>,
    %70 = vector.shape_cast %60 : vector<24x1xf32> to vector<24x1xf32>
    %71 = vector.broadcast %70 : vector<24x1xf32> to vector<24x8xf32>
    %c0_42 = arith.constant 0 : index
    %c8_43 = arith.constant 8 : index
    %72 = vector.load %arg8[%c0_42, %c8_43] : memref<24x32xf32, #tpu.memory_space<vmem>>, vector<24x8xf32>
    tpu.vector_store %arg8[%c0_42, %c8_43], %71 {strides = array<i32>} : memref<24x32xf32, #tpu.memory_space<vmem>>, vector<24x8xf32>,
    %73 = vector.extract_strided_slice %4 {offsets = [0, 16], sizes = [24, 8], strides = [1, 1]} : vector<24x32xf32> to vector<24x8xf32>
    %cst_44 = arith.constant 0.353553385 : f32
    %74 = vector.broadcast %cst_44 : f32 to vector<24x8xf32>
    %75 = arith.mulf %73, %74 : vector<24x8xf32>
    %76 = vector.extract_strided_slice %6 {offsets = [0, 16], sizes = [24, 8], strides = [1, 1]} : vector<24x32xf32> to vector<24x8xf32>
    %77 = vector.extract_strided_slice %8 {offsets = [0, 16], sizes = [24, 8], strides = [1, 1]} : vector<24x32xf32> to vector<24x8xf32>
    %cst_45 = arith.constant dense<0.000000e+00> : vector<24x24xf32>
    %78 = tpu.matmul %75, %76, %cst_45 {dimension_numbers = #tpu.dot_dimension_numbers<[1], [1], [0], [0], [0, 0, 1, 0], [], []>} : vector<24x8xf32>, vector<24x8xf32>, vector<24x24xf32> -> vector<24x24xf32>
    %c0_46 = arith.constant 0 : index
    %c16 = arith.constant 16 : index
    %79 = vector.load %arg7[%c0_46, %c16] : memref<24x32xf32, #tpu.memory_space<vmem>>, vector<24x1xf32>
    %c0_47 = arith.constant 0 : index
    %c16_48 = arith.constant 16 : index
    %80 = vector.load %arg8[%c0_47, %c16_48] : memref<24x32xf32, #tpu.memory_space<vmem>>, vector<24x1xf32>
    %cst_49 = arith.constant dense<0xFF800000> : vector<24xf32>
    %81 = vector.multi_reduction <maximumf>, %78, %cst_49 [1] : vector<24x24xf32> to vector<24xf32>
    %82 = vector.shape_cast %81 : vector<24xf32> to vector<24x1xf32>
    %83 = arith.maximumf %79, %82 : vector<24x1xf32>
    %84 = arith.subf %79, %83 : vector<24x1xf32>
    %85 = math.exp %84 : vector<24x1xf32>
    %86 = vector.broadcast %83 : vector<24x1xf32> to vector<24x24xf32>
    %87 = arith.subf %78, %86 : vector<24x24xf32>
    %88 = math.exp %87 : vector<24x24xf32>
    %89 = arith.mulf %85, %80 : vector<24x1xf32>
    %cst_50 = arith.constant dense<0.000000e+00> : vector<24xf32>
    %90 = vector.multi_reduction <add>, %88, %cst_50 [1] : vector<24x24xf32> to vector<24xf32>
    %91 = vector.shape_cast %90 : vector<24xf32> to vector<24x1xf32>
    %92 = arith.addf %89, %91 : vector<24x1xf32>
    %cst_51 = arith.constant dense<0.000000e+00> : vector<24x8xf32>
    %93 = tpu.matmul %88, %77, %cst_51 {dimension_numbers = #tpu.dot_dimension_numbers<[1], [0], [0], [1], [0, 0, 1, 1], [], []>} : vector<24x24xf32>, vector<24x8xf32>, vector<24x8xf32> -> vector<24x8xf32>
    %c0_52 = arith.constant 0 : index
    %c16_53 = arith.constant 16 : index
    %94 = vector.load %arg9[%c0_52, %c16_53] : memref<24x32xf32, #tpu.memory_space<vmem>>, vector<24x8xf32>
    %95 = vector.broadcast %85 : vector<24x1xf32> to vector<24x8xf32>
    %96 = arith.mulf %95, %94 : vector<24x8xf32>
    %97 = arith.addf %96, %93 : vector<24x8xf32>
    %c0_54 = arith.constant 0 : index
    %c16_55 = arith.constant 16 : index
    %98 = vector.load %arg9[%c0_54, %c16_55] : memref<24x32xf32, #tpu.memory_space<vmem>>, vector<24x8xf32>
    tpu.vector_store %arg9[%c0_54, %c16_55], %97 {strides = array<i32>} : memref<24x32xf32, #tpu.memory_space<vmem>>, vector<24x8xf32>,
    %99 = vector.shape_cast %83 : vector<24x1xf32> to vector<24x1xf32>
    %100 = vector.broadcast %99 : vector<24x1xf32> to vector<24x8xf32>
    %c0_56 = arith.constant 0 : index
    %c16_57 = arith.constant 16 : index
    %101 = vector.load %arg7[%c0_56, %c16_57] : memref<24x32xf32, #tpu.memory_space<vmem>>, vector<24x8xf32>
    tpu.vector_store %arg7[%c0_56, %c16_57], %100 {strides = array<i32>} : memref<24x32xf32, #tpu.memory_space<vmem>>, vector<24x8xf32>,
    %102 = vector.shape_cast %92 : vector<24x1xf32> to vector<24x1xf32>
    %103 = vector.broadcast %102 : vector<24x1xf32> to vector<24x8xf32>
    %c0_58 = arith.constant 0 : index
    %c16_59 = arith.constant 16 : index
    %104 = vector.load %arg8[%c0_58, %c16_59] : memref<24x32xf32, #tpu.memory_space<vmem>>, vector<24x8xf32>
    tpu.vector_store %arg8[%c0_58, %c16_59], %103 {strides = array<i32>} : memref<24x32xf32, #tpu.memory_space<vmem>>, vector<24x8xf32>,
    %105 = vector.extract_strided_slice %4 {offsets = [0, 24], sizes = [24, 8], strides = [1, 1]} : vector<24x32xf32> to vector<24x8xf32>
    %cst_60 = arith.constant 0.353553385 : f32
    %106 = vector.broadcast %cst_60 : f32 to vector<24x8xf32>
    %107 = arith.mulf %105, %106 : vector<24x8xf32>
    %108 = vector.extract_strided_slice %6 {offsets = [0, 24], sizes = [24, 8], strides = [1, 1]} : vector<24x32xf32> to vector<24x8xf32>
    %109 = vector.extract_strided_slice %8 {offsets = [0, 24], sizes = [24, 8], strides = [1, 1]} : vector<24x32xf32> to vector<24x8xf32>
    %cst_61 = arith.constant dense<0.000000e+00> : vector<24x24xf32>
    %110 = tpu.matmul %107, %108, %cst_61 {dimension_numbers = #tpu.dot_dimension_numbers<[1], [1], [0], [0], [0, 0, 1, 0], [], []>} : vector<24x8xf32>, vector<24x8xf32>, vector<24x24xf32> -> vector<24x24xf32>
    %c0_62 = arith.constant 0 : index
    %c24 = arith.constant 24 : index
    %111 = vector.load %arg7[%c0_62, %c24] : memref<24x32xf32, #tpu.memory_space<vmem>>, vector<24x1xf32>
    %c0_63 = arith.constant 0 : index
    %c24_64 = arith.constant 24 : index
    %112 = vector.load %arg8[%c0_63, %c24_64] : memref<24x32xf32, #tpu.memory_space<vmem>>, vector<24x1xf32>
    %cst_65 = arith.constant dense<0xFF800000> : vector<24xf32>
    %113 = vector.multi_reduction <maximumf>, %110, %cst_65 [1] : vector<24x24xf32> to vector<24xf32>
    %114 = vector.shape_cast %113 : vector<24xf32> to vector<24x1xf32>
    %115 = arith.maximumf %111, %114 : vector<24x1xf32>
    %116 = arith.subf %111, %115 : vector<24x1xf32>
    %117 = math.exp %116 : vector<24x1xf32>
    %118 = vector.broadcast %115 : vector<24x1xf32> to vector<24x24xf32>
    %119 = arith.subf %110, %118 : vector<24x24xf32>
    %120 = math.exp %119 : vector<24x24xf32>
    %121 = arith.mulf %117, %112 : vector<24x1xf32>
    %cst_66 = arith.constant dense<0.000000e+00> : vector<24xf32>
    %122 = vector.multi_reduction <add>, %120, %cst_66 [1] : vector<24x24xf32> to vector<24xf32>
    %123 = vector.shape_cast %122 : vector<24xf32> to vector<24x1xf32>
    %124 = arith.addf %121, %123 : vector<24x1xf32>
    %cst_67 = arith.constant dense<0.000000e+00> : vector<24x8xf32>
    %125 = tpu.matmul %120, %109, %cst_67 {dimension_numbers = #tpu.dot_dimension_numbers<[1], [0], [0], [1], [0, 0, 1, 1], [], []>} : vector<24x24xf32>, vector<24x8xf32>, vector<24x8xf32> -> vector<24x8xf32>
    %c0_68 = arith.constant 0 : index
    %c24_69 = arith.constant 24 : index
    %126 = vector.load %arg9[%c0_68, %c24_69] : memref<24x32xf32, #tpu.memory_space<vmem>>, vector<24x8xf32>
    %127 = vector.broadcast %117 : vector<24x1xf32> to vector<24x8xf32>
    %128 = arith.mulf %127, %126 : vector<24x8xf32>
    %129 = arith.addf %128, %125 : vector<24x8xf32>
    %c0_70 = arith.constant 0 : index
    %c24_71 = arith.constant 24 : index
    %130 = vector.load %arg9[%c0_70, %c24_71] : memref<24x32xf32, #tpu.memory_space<vmem>>, vector<24x8xf32>
    tpu.vector_store %arg9[%c0_70, %c24_71], %129 {strides = array<i32>} : memref<24x32xf32, #tpu.memory_space<vmem>>, vector<24x8xf32>,
    %131 = vector.shape_cast %115 : vector<24x1xf32> to vector<24x1xf32>
    %132 = vector.broadcast %131 : vector<24x1xf32> to vector<24x8xf32>
    %c0_72 = arith.constant 0 : index
    %c24_73 = arith.constant 24 : index
    %133 = vector.load %arg7[%c0_72, %c24_73] : memref<24x32xf32, #tpu.memory_space<vmem>>, vector<24x8xf32>
    tpu.vector_store %arg7[%c0_72, %c24_73], %132 {strides = array<i32>} : memref<24x32xf32, #tpu.memory_space<vmem>>, vector<24x8xf32>,
    %134 = vector.shape_cast %124 : vector<24x1xf32> to vector<24x1xf32>
    %135 = vector.broadcast %134 : vector<24x1xf32> to vector<24x8xf32>
    %c0_74 = arith.constant 0 : index
    %c24_75 = arith.constant 24 : index
    %136 = vector.load %arg8[%c0_74, %c24_75] : memref<24x32xf32, #tpu.memory_space<vmem>>, vector<24x8xf32>
    tpu.vector_store %arg8[%c0_74, %c24_75], %135 {strides = array<i32>} : memref<24x32xf32, #tpu.memory_space<vmem>>, vector<24x8xf32>,
    %c0_i32_76 = arith.constant 0 : i32
    %137 = arith.cmpi eq, %arg2, %c0_i32_76 : i32
    %138 = arith.extui %137 : i1 to i32
    %c0_i32_77 = arith.constant 0 : i32
    %139 = arith.cmpi ne, %138, %c0_i32_77 : i32
    scf.if %139 {
      %c0_78 = arith.constant 0 : index
      %c0_79 = arith.constant 0 : index
      %140 = vector.load %arg8[%c0_78, %c0_79] : memref<24x32xf32, #tpu.memory_space<vmem>>, vector<24x32xf32>
      %141 = tpu.reciprocal %140 {approx = true} : vector<24x32xf32> -> vector<24x32xf32>
      %c0_80 = arith.constant 0 : index
      %c0_81 = arith.constant 0 : index
      %142 = vector.load %arg9[%c0_80, %c0_81] : memref<24x32xf32, #tpu.memory_space<vmem>>, vector<24x32xf32>
      %143 = arith.mulf %142, %141 : vector<24x32xf32>
      %c0_82 = arith.constant 0 : index
      %c0_83 = arith.constant 0 : index
      %c0_84 = arith.constant 0 : index
      %144 = vector.load %arg6[%c0_82, %c0_83, %c0_84] : memref<1x24x32xf32, #tpu.memory_space<vmem>>, vector<1x24x32xf32>
      %145 = vector.shape_cast %144 : vector<1x24x32xf32> to vector<24x32xf32>
      %146 = vector.shape_cast %143 : vector<24x32xf32> to vector<1x24x32xf32>
      tpu.vector_store %arg6[%c0_82, %c0_83, %c0_84], %146 {strides = array<i32>} : memref<1x24x32xf32, #tpu.memory_space<vmem>>, vector<1x24x32xf32>,
    } else {
    }
    return
  }
  func.func @transform_0(%arg0: i32, %arg1: i32, %arg2: i32) -> (i32, i32, i32, i32) {
    %c0_i32 = arith.constant 0 : i32
    %c0_i32_0 = arith.constant 0 : i32
    %c0_i32_1 = arith.constant 0 : i32
    return %c0_i32, %arg0, %arg1, %c0_i32_0 : i32, i32, i32, i32
  }
  func.func @transform_1(%arg0: i32, %arg1: i32, %arg2: i32) -> (i32, i32, i32, i32) {
    %c1_i32 = arith.constant 1 : i32
    %c0_i32 = arith.constant 0 : i32
    %c0_i32_0 = arith.constant 0 : i32
    return %c1_i32, %arg0, %arg2, %c0_i32 : i32, i32, i32, i32
  }
  func.func @transform_2(%arg0: i32, %arg1: i32, %arg2: i32) -> (i32, i32, i32, i32) {
    %c2_i32 = arith.constant 2 : i32
    %c0_i32 = arith.constant 0 : i32
    %c0_i32_0 = arith.constant 0 : i32
    return %c2_i32, %arg0, %arg2, %c0_i32 : i32, i32, i32, i32
  }
  func.func @transform_3(%arg0: i32, %arg1: i32, %arg2: i32) -> (i32, i32, i32) {
    %c0_i32 = arith.constant 0 : i32
    %c0_i32_0 = arith.constant 0 : i32
    return %arg0, %arg1, %c0_i32 : i32, i32, i32
  }
}

module attributes {stable_mosaic.version = 11 : i64} {
  func.func @_matmul_bias_kernel(%arg0: i32, %arg1: i32, %arg2: i32, %arg3: memref<32x32xf32, #tpu.memory_space<vmem>>, %arg4: memref<32x32xf32, #tpu.memory_space<vmem>>, %arg5: memref<1x32xf32, #tpu.memory_space<vmem>>, %arg6: memref<32x32xf32, #tpu.memory_space<vmem>>, %arg7: memref<32x32xf32, #tpu.memory_space<vmem>>) attributes {dimension_semantics = [#tpu.dimension_semantics<parallel>, #tpu.dimension_semantics<parallel>, #tpu.dimension_semantics<arbitrary>], iteration_bounds = array<i64: 1, 1, 1>, scalar_prefetch = 0 : i64, scratch_operands = 1 : i64, tpu.core_type = #tpu.core_type<tc>, window_params = [{transform_indices = @transform_0, window_bounds = array<i64: 32, 32>}, {transform_indices = @transform_1, window_bounds = array<i64: 32, 32>}, {transform_indices = @transform_2, window_bounds = array<i64: 1, 32>}, {transform_indices = @transform_3, window_bounds = array<i64: 32, 32>}]} {
    %c0_i32 = arith.constant 0 : i32
    %0 = arith.cmpi eq, %arg2, %c0_i32 : i32
    %1 = arith.extui %0 : i1 to i32
    %c0_i32_0 = arith.constant 0 : i32
    %2 = arith.cmpi ne, %1, %c0_i32_0 : i32
    scf.if %2 {
      %cst_10 = arith.constant 0.000000e+00 : f32
      %12 = vector.broadcast %cst_10 : f32 to vector<32x32xf32>
      %c0_11 = arith.constant 0 : index
      %c0_12 = arith.constant 0 : index
      %13 = vector.load %arg7[%c0_11, %c0_12] : memref<32x32xf32, #tpu.memory_space<vmem>>, vector<32x32xf32>
      tpu.vector_store %arg7[%c0_11, %c0_12], %12 {strides = array<i32>} : memref<32x32xf32, #tpu.memory_space<vmem>>, vector<32x32xf32>,
    } else {
    }
    %c0 = arith.constant 0 : index
    %c0_1 = arith.constant 0 : index
    %3 = vector.load %arg7[%c0, %c0_1] : memref<32x32xf32, #tpu.memory_space<vmem>>, vector<32x32xf32>
    %c0_2 = arith.constant 0 : index
    %c0_3 = arith.constant 0 : index
    %4 = vector.load %arg3[%c0_2, %c0_3] : memref<32x32xf32, #tpu.memory_space<vmem>>, vector<32x32xf32>
    %c0_4 = arith.constant 0 : index
    %c0_5 = arith.constant 0 : index
    %5 = vector.load %arg4[%c0_4, %c0_5] : memref<32x32xf32, #tpu.memory_space<vmem>>, vector<32x32xf32>
    %cst = arith.constant dense<0.000000e+00> : vector<32x32xf32>
    %6 = tpu.matmul %4, %5, %cst {dimension_numbers = #tpu.dot_dimension_numbers<[1], [0], [0], [1], [0, 0, 1, 1], [], []>} : vector<32x32xf32>, vector<32x32xf32>, vector<32x32xf32> -> vector<32x32xf32>
    %7 = arith.addf %3, %6 : vector<32x32xf32>
    %c0_6 = arith.constant 0 : index
    %c0_7 = arith.constant 0 : index
    %8 = vector.load %arg7[%c0_6, %c0_7] : memref<32x32xf32, #tpu.memory_space<vmem>>, vector<32x32xf32>
    tpu.vector_store %arg7[%c0_6, %c0_7], %7 {strides = array<i32>} : memref<32x32xf32, #tpu.memory_space<vmem>>, vector<32x32xf32>,
    %c0_i32_8 = arith.constant 0 : i32
    %9 = arith.cmpi eq, %arg2, %c0_i32_8 : i32
    %10 = arith.extui %9 : i1 to i32
    %c0_i32_9 = arith.constant 0 : i32
    %11 = arith.cmpi ne, %10, %c0_i32_9 : i32
    scf.if %11 {
      %c0_10 = arith.constant 0 : index
      %c0_11 = arith.constant 0 : index
      %12 = vector.load %arg7[%c0_10, %c0_11] : memref<32x32xf32, #tpu.memory_space<vmem>>, vector<32x32xf32>
      %c0_12 = arith.constant 0 : index
      %c0_13 = arith.constant 0 : index
      %13 = vector.load %arg5[%c0_12, %c0_13] : memref<1x32xf32, #tpu.memory_space<vmem>>, vector<1x32xf32>
      %14 = vector.broadcast %13 : vector<1x32xf32> to vector<32x32xf32>
      %15 = arith.addf %12, %14 : vector<32x32xf32>
      %c0_14 = arith.constant 0 : index
      %c0_15 = arith.constant 0 : index
      %16 = vector.load %arg6[%c0_14, %c0_15] : memref<32x32xf32, #tpu.memory_space<vmem>>, vector<32x32xf32>
      tpu.vector_store %arg6[%c0_14, %c0_15], %15 {strides = array<i32>} : memref<32x32xf32, #tpu.memory_space<vmem>>, vector<32x32xf32>,
    } else {
    }
    return
  }
  func.func @transform_0(%arg0: i32, %arg1: i32, %arg2: i32) -> (i32, i32) {
    %c0_i32 = arith.constant 0 : i32
    return %arg0, %arg2 : i32, i32
  }
  func.func @transform_1(%arg0: i32, %arg1: i32, %arg2: i32) -> (i32, i32) {
    %c0_i32 = arith.constant 0 : i32
    return %arg2, %arg1 : i32, i32
  }
  func.func @transform_2(%arg0: i32, %arg1: i32, %arg2: i32) -> (i32, i32) {
    %c0_i32 = arith.constant 0 : i32
    %c0_i32_0 = arith.constant 0 : i32
    return %c0_i32, %arg1 : i32, i32
  }
  func.func @transform_3(%arg0: i32, %arg1: i32, %arg2: i32) -> (i32, i32) {
    %c0_i32 = arith.constant 0 : i32
    return %arg0, %arg1 : i32, i32
  }
}

module attributes {stable_mosaic.version = 11 : i64} {
  func.func @_matmul_bias_kernel(%arg0: i32, %arg1: i32, %arg2: i32, %arg3: memref<16x32xf32, #tpu.memory_space<vmem>>, %arg4: memref<32x32xf32, #tpu.memory_space<vmem>>, %arg5: memref<1x32xf32, #tpu.memory_space<vmem>>, %arg6: memref<16x32xf32, #tpu.memory_space<vmem>>, %arg7: memref<16x32xf32, #tpu.memory_space<vmem>>) attributes {dimension_semantics = [#tpu.dimension_semantics<parallel>, #tpu.dimension_semantics<parallel>, #tpu.dimension_semantics<arbitrary>], iteration_bounds = array<i64: 1, 1, 1>, scalar_prefetch = 0 : i64, scratch_operands = 1 : i64, tpu.core_type = #tpu.core_type<tc>, window_params = [{transform_indices = @transform_0, window_bounds = array<i64: 16, 32>}, {transform_indices = @transform_1, window_bounds = array<i64: 32, 32>}, {transform_indices = @transform_2, window_bounds = array<i64: 1, 32>}, {transform_indices = @transform_3, window_bounds = array<i64: 16, 32>}]} {
    %c0_i32 = arith.constant 0 : i32
    %0 = arith.cmpi eq, %arg2, %c0_i32 : i32
    %1 = arith.extui %0 : i1 to i32
    %c0_i32_0 = arith.constant 0 : i32
    %2 = arith.cmpi ne, %1, %c0_i32_0 : i32
    scf.if %2 {
      %cst_10 = arith.constant 0.000000e+00 : f32
      %12 = vector.broadcast %cst_10 : f32 to vector<16x32xf32>
      %c0_11 = arith.constant 0 : index
      %c0_12 = arith.constant 0 : index
      %13 = vector.load %arg7[%c0_11, %c0_12] : memref<16x32xf32, #tpu.memory_space<vmem>>, vector<16x32xf32>
      tpu.vector_store %arg7[%c0_11, %c0_12], %12 {strides = array<i32>} : memref<16x32xf32, #tpu.memory_space<vmem>>, vector<16x32xf32>,
    } else {
    }
    %c0 = arith.constant 0 : index
    %c0_1 = arith.constant 0 : index
    %3 = vector.load %arg7[%c0, %c0_1] : memref<16x32xf32, #tpu.memory_space<vmem>>, vector<16x32xf32>
    %c0_2 = arith.constant 0 : index
    %c0_3 = arith.constant 0 : index
    %4 = vector.load %arg3[%c0_2, %c0_3] : memref<16x32xf32, #tpu.memory_space<vmem>>, vector<16x32xf32>
    %c0_4 = arith.constant 0 : index
    %c0_5 = arith.constant 0 : index
    %5 = vector.load %arg4[%c0_4, %c0_5] : memref<32x32xf32, #tpu.memory_space<vmem>>, vector<32x32xf32>
    %cst = arith.constant dense<0.000000e+00> : vector<16x32xf32>
    %6 = tpu.matmul %4, %5, %cst {dimension_numbers = #tpu.dot_dimension_numbers<[1], [0], [0], [1], [0, 0, 1, 1], [], []>} : vector<16x32xf32>, vector<32x32xf32>, vector<16x32xf32> -> vector<16x32xf32>
    %7 = arith.addf %3, %6 : vector<16x32xf32>
    %c0_6 = arith.constant 0 : index
    %c0_7 = arith.constant 0 : index
    %8 = vector.load %arg7[%c0_6, %c0_7] : memref<16x32xf32, #tpu.memory_space<vmem>>, vector<16x32xf32>
    tpu.vector_store %arg7[%c0_6, %c0_7], %7 {strides = array<i32>} : memref<16x32xf32, #tpu.memory_space<vmem>>, vector<16x32xf32>,
    %c0_i32_8 = arith.constant 0 : i32
    %9 = arith.cmpi eq, %arg2, %c0_i32_8 : i32
    %10 = arith.extui %9 : i1 to i32
    %c0_i32_9 = arith.constant 0 : i32
    %11 = arith.cmpi ne, %10, %c0_i32_9 : i32
    scf.if %11 {
      %c0_10 = arith.constant 0 : index
      %c0_11 = arith.constant 0 : index
      %12 = vector.load %arg7[%c0_10, %c0_11] : memref<16x32xf32, #tpu.memory_space<vmem>>, vector<16x32xf32>
      %c0_12 = arith.constant 0 : index
      %c0_13 = arith.constant 0 : index
      %13 = vector.load %arg5[%c0_12, %c0_13] : memref<1x32xf32, #tpu.memory_space<vmem>>, vector<1x32xf32>
      %14 = vector.broadcast %13 : vector<1x32xf32> to vector<16x32xf32>
      %15 = arith.addf %12, %14 : vector<16x32xf32>
      %c0_14 = arith.constant 0 : index
      %c0_15 = arith.constant 0 : index
      %16 = vector.load %arg6[%c0_14, %c0_15] : memref<16x32xf32, #tpu.memory_space<vmem>>, vector<16x32xf32>
      tpu.vector_store %arg6[%c0_14, %c0_15], %15 {strides = array<i32>} : memref<16x32xf32, #tpu.memory_space<vmem>>, vector<16x32xf32>,
    } else {
    }
    return
  }
  func.func @transform_0(%arg0: i32, %arg1: i32, %arg2: i32) -> (i32, i32) {
    %c0_i32 = arith.constant 0 : i32
    return %arg0, %arg2 : i32, i32
  }
  func.func @transform_1(%arg0: i32, %arg1: i32, %arg2: i32) -> (i32, i32) {
    %c0_i32 = arith.constant 0 : i32
    return %arg2, %arg1 : i32, i32
  }
  func.func @transform_2(%arg0: i32, %arg1: i32, %arg2: i32) -> (i32, i32) {
    %c0_i32 = arith.constant 0 : i32
    %c0_i32_0 = arith.constant 0 : i32
    return %c0_i32, %arg1 : i32, i32
  }
  func.func @transform_3(%arg0: i32, %arg1: i32, %arg2: i32) -> (i32, i32) {
    %c0_i32 = arith.constant 0 : i32
    return %arg0, %arg1 : i32, i32
  }
}

</mosaic_0001>

<bundles_post_ra>
// kernel: joint_attention_forward.6
= control target key start
LH: loop header
LB: loop body
LE: loop exit
PB: predicated region body
PF: predicated region fallthrough
CT: control target
= control target key end

     0   :  { %s628_s9 = smov 0   ;;  %s630_s10 = smov 0   ;;  %s696_s0 = inlined_call_operand.vmem [shape: f32[32,32], index: 0, kind: input, shape index: {}]   ;;  %s697_s1 = inlined_call_operand.vmem [shape: f32[3,32,32], index: 1, kind: input, shape index: {}]   ;;  %s698_s2 = inlined_call_operand.vmem [shape: f32[3,32,32], index: 2, kind: output, shape index: {}]  }
   0x1   :  { %s632_s11 = smov 0  }
   0x2 LB: > { %s38_s12 = sadd.s32 1, %s606_s10  ;;  %p516_p0 = scmp.ge.s32.totalorder %s610_s11, 1  ;;  %s610_s11 = sphi %s632_s11, %s12_s11   ;;  %s606_s10 = sphi %s630_s10, %s700_s10   ;;  %s602_s9 = sphi %s628_s9, %s699_s9  }
   0x3   : > { %p40_p1 = scmp.ge.s32.totalorder %s38_s12, 3  ;;  %p170_p2 = scmp.lt.s32.totalorder %s610_s11, 4 }
   0x5   : > { %s702_s12 = smov (%p40_p1, %s38_s12), 0  ;;  %p171_p3 = pnand %p516_p0, %p170_p2 }
   0x6   : > { %p224_p4 = scmp.lt.s32.totalorder (!%p171_p3), %s602_s9, 2  ;;  %vm253_vm0 = vcmask (!%p171_p3), 261120   ;;  %v262_v0 = vld [vmem:[%s696_s0] sm:$0xff] (!%p171_p3)  ;;  %v264_v1 = vld [vmem:[%s696_s0 + $0x10] sm:$0xff] (!%p171_p3)  ;;  %v612_v2 = vmov (!%p171_p3), 0.0   ;;  %v263_v9 = vld [vmem:[%s696_s0 + $0x8] sm:$0xff] (!%p171_p3) }
   0x7   : > { %174 = sbr.rel (%p171_p3) target bundleno = 252 (0xfc), region = 28  ;;  %545 = vmatprep.mubr.msk.f32.mxu0 (!%p171_p3), %vm253_vm0, %v262_v0  ;;  %548 = vmatprep.mubr.msk.f32.mxu1 (!%p171_p3), %vm253_vm0, %v264_v1  ;;  %255 = vst.msk [vmem:[#allocation2 + $0x8] sm:$0xff] (!%p171_p3), %vm253_vm0, %v612_v2  ;;  %254 = vst.msk [vmem:[#allocation2] sm:$0xff] (!%p171_p3), %vm253_vm0, %v612_v2  ;;  %v265_v10 = vld [vmem:[%s696_s0 + $0x18] sm:$0xff] (!%p171_p3) }
   0x8   : > { %256 = vst.msk [vmem:[#allocation2 + $0x10] sm:$0xff] (!%p171_p3), %vm253_vm0, %v612_v2  ;;  %257 = vst.msk [vmem:[#allocation2 + $0x18] sm:$0xff] (!%p171_p3), %vm253_vm0, %v612_v2 }
   0xe   : > { %s704_s9 = smov (!%p224_p4, %s602_s9), 2  ;;  %v259_v11 = vld [vmem:[#allocation2 + $0x8] sm:$0xff]  ;;  %v258_v13 = vld [vmem:[#allocation2] sm:$0xff] }
   0xf   : > { %s527_s17 = sshll.u32 %s704_s9, 5  ;;  %v261_v12 = vld [vmem:[#allocation2 + $0x18] sm:$0xff]  ;;  %v260_v14 = vld [vmem:[#allocation2 + $0x10] sm:$0xff] }
  0x10   : > { %s234_s20 = scalar_lea.vmem %s697_s1, %s527_s17  ;;  %s247_s27 = scalar_lea.vmem %s698_s2, %s527_s17 }
  0x11   : > { %v266_v3 = vld [vmem:[%s234_s20] sm:$0xff]  ;;  %v267_v4 = vld [vmem:[%s234_s20 + $0x8] sm:$0xff]  ;;  %v268_v5 = vld [vmem:[%s234_s20 + $0x10] sm:$0xff] }
  0x12   : > { %v551_v6 = vpack.c.bf16 %v267_v4, %v266_v3  ;;  %v269_v7 = vld [vmem:[%s234_s20 + $0x18] sm:$0xff] }
  0x13   : > { %v555_v8 = vpack.c.bf16 %v269_v7, %v268_v5 }
  0x14   : > { %552 = vmatprep.subr.bf16.mxu0 %v551_v6  ;;  %559 = vmatprep.subr.bf16.mxu1 %v551_v6 }
  0x15   : > { %554 = vmatpush3.bf16.msra.mxu0 %v551_v6  ;;  %561 = vmatpush3.bf16.msra.mxu1 %v551_v6 }
  0x16   : > { %556 = vmatprep.subr.bf16.mxu0 %v555_v8  ;;  %560 = vmatprep.subr.bf16.mxu1 %v555_v8 }
  0x19   : > { %558 = vmatpush3.bf16.msra.mxu0 %v555_v8  ;;  %562 = vmatpush3.bf16.msra.mxu1 %v555_v8 }
  0x1c   : > { %546 = vmatmul.mubr.msk.f32.vlgmr.msra.gmra.mrb[0].mxu0 %vm253_vm0, %v263_v9  ;;  %549 = vmatmul.mubr.msk.f32.vlgmr.msra.gmra.mrb[0].mxu1 %vm253_vm0, %v265_v10 }
  0xef   : > { %v547_v15 = vpop.f32.mrb[0].mxu0  ;;  %v550_v16 = vpop.f32.mrb[0].mxu1 }
  0xf0   : > { %v369_v17 = vadd.f32 %v547_v15, %v259_v11  ;;  %v371_v18 = vadd.f32 %v550_v16, %v261_v12  ;;  %v349_v19 = vpop.f32.mrb[1].mxu0  ;;  %v359_v20 = vpop.f32.mrb[1].mxu1 }
  0xf1   : > { %v368_v21 = vadd.f32 %v349_v19, %v258_v13  ;;  %v370_v22 = vadd.f32 %v359_v20, %v260_v14 }
  0xf2   : > { %373 = vst.msk [vmem:[#allocation2 + $0x8] sm:$0xff] %vm253_vm0, %v369_v17  ;;  %375 = vst.msk [vmem:[#allocation2 + $0x18] sm:$0xff] %vm253_vm0, %v371_v18 }
  0xf3   : > { %372 = vst.msk [vmem:[#allocation2] sm:$0xff] %vm253_vm0, %v368_v21  ;;  %374 = vst.msk [vmem:[#allocation2 + $0x10] sm:$0xff] %vm253_vm0, %v370_v22 }
  0xf9   : > { %v380_v23 = vld [vmem:[#allocation2 + $0x8] sm:$0xff]  ;;  %v382_v24 = vld [vmem:[#allocation2 + $0x18] sm:$0xff] }
  0xfa   : > { %384 = vst.msk [vmem:[%s247_s27 + $0x8] sm:$0xff] %vm253_vm0, %v380_v23  ;;  %386 = vst.msk [vmem:[%s247_s27 + $0x18] sm:$0xff] %vm253_vm0, %v382_v24  ;;  %v379_v25 = vld [vmem:[#allocation2] sm:$0xff]  ;;  %v381_v26 = vld [vmem:[#allocation2 + $0x10] sm:$0xff] }
  0xfb   : > { %383 = vst.msk [vmem:[%s247_s27] sm:$0xff] %vm253_vm0, %v379_v25  ;;  %385 = vst.msk [vmem:[%s247_s27 + $0x10] sm:$0xff] %vm253_vm0, %v381_v26 }
  0xfc PF: > { %s12_s11 = sadd.s32 1, %s610_s11   ;;  %s699_s9 = smov %s606_s10 }
  0xfd   : > { %p9_p5 = scmp.ge.s32.totalorder %s12_s11, 5   ;;  %s700_s10 = smov %s702_s12 }
  0xff   :  { %11 = sbr.rel (!%p9_p5) target bundleno = 2 (0x2), region = 69 }

// kernel: joint_attention_forward.5
= control target key start
LH: loop header
LB: loop body
LE: loop exit
PB: predicated region body
PF: predicated region fallthrough
CT: control target
= control target key end

     0   :  { %7 = vsyncpa [#allocation4], 0  ;;  %s899_s0 = inlined_call_operand.hbm [shape: f32[16,32], index: 0, kind: input, shape index: {}]   ;;  %s900_s1 = inlined_call_operand.hbm [shape: f32[3,32,32], index: 1, kind: input, shape index: {}]   ;;  %s901_s2 = inlined_call_operand.vmem [shape: f32[3,16,32], index: 2, kind: output, shape index: {}]  }
   0x1   :  { %8 = vsyncpa [#allocation6], 0 }
   0x2   :  { %10 = vsyncpa [#allocation6 + $0x1], 0  ;;  %s727_s9 = smov 0   ;;  %s729_s10 = smov 0  }
   0x3   :  { %s731_s11 = smov 0   ;;  %s733_s12 = smov 0  }
   0x4   :  { %s735_s13 = smov 0   ;;  %s737_s14 = smov 0  }
   0x5 LB: > { %s480_s15 = sadd.s32 4294967295, %s705_s14   ;;  %p94_p0 = scmp.ne.s32.totalorder %s689_s10, %s685_s9  ;;  %s705_s14 = sphi %s737_s14, %s16_s14   ;;  %s701_s13 = sphi %s735_s13, %s918_s13   ;;  %s697_s12 = sphi %s733_s12, %s917_s12   ;;  %s693_s11 = sphi %s731_s11, %s916_s11   ;;  %s689_s10 = sphi %s729_s10, %s915_s10   ;;  %s685_s9 = sphi %s727_s9, %s914_s9  }
   0x6   : > { %p757_p1 = scmp.eq.s32.totalorder %s480_s15, 0  ;;  %p482_p2 = scmp.ge.s32.totalorder %s705_s14, 1 }
   0x7   : > { %p135_p3 = scmp.lt.s32.totalorder %s705_s14, 4  ;;  %s707_s19 = smov [#allocation3]  }
   0x8   : > { %s906_s16 = scalar_select %p757_p1, 1, 0 }
   0x9   : > { %p765_p4 = por %p757_p1, %p94_p0  ;;  %p769_p5 = pnand %p482_p2, %p135_p3 }
   0xa   : > { %s151_s20 = sshll.u32 %s707_s19, 4  ;;  %s42_s22 = sadd.s32 1, %s701_s13  ;;  %s152_s20 = int_to_ptr.vmem [resolvable:$true] %s151_s20 }
   0xb   : > { %s907_s17 = scalar_select %p765_p4, 1, 0 }
   0xc   : > { %s908_s18 = scalar_select %p769_p5, 1, 0 }
   0xd   : > { %p530_p6 = pneg %p769_p5  ;;  %s593_s25 = scalar_lea.hbm %s899_s0, 256 }
   0xe   : > { %p594_p8 = scmp.ne.s32.totalorder %s899_s0, %s593_s25  ;;  %p600_p12 = scmp.lt.u32.totalorder %s593_s25, %s899_s0 }
   0xf   : > { %p777_p7 = pnand %p530_p6, %p757_p1 }
  0x11   : > { %p595_p9 = pneg %p777_p7 }
  0x13   : > { %p596_p10 = pnand %p595_p9, %p594_p8 }
  0x15   : > { %p597_p11 = pneg %p596_p10 }
  0x17   : > { %p602_p13 = pnand %p600_p12, %p597_p11 }
  0x19   : > { %605 = shalt.err (!%p602_p13)
}
  0x1a   : > { %s606_s30 = scalar_lea.vmem %s152_s20, 256  ;;  %p614_p6 = scmp.lt.s32.totalorder %s152_s20, %s152_s20 }
  0x1b   : > { %p607_p0 = scmp.ne.s32.totalorder %s152_s20, %s606_s30  ;;  %p615_p4 = scmp.lt.s32.totalorder %s606_s30, %s606_s30 }
  0x1d   : > { %p609_p2 = pnand %p607_p0, %p595_p9  ;;  %p616_p1 = por %p615_p4, %p614_p6 }
  0x1f   : > { %p610_p3 = pneg %p609_p2 }
  0x21   : > { %p617_p5 = pnand %p616_p1, %p610_p3 }
  0x23   : > { %620 = shalt.err (!%p617_p5)
}
  0x24   : > { %s708_s3 = smov 128   ;;  %s709_s4 = smov 8  }
  0x25   : > { %533 = dma.hbm_to_vmem [thread:$0]  (!%p777_p7), %s899_s0, 256, %s152_s20, [#allocation4], %s708_s3, %s708_s3, %s709_s4  }
  0x26   : > { %p44_p1 = scmp.ge.s32.totalorder %s42_s22, 3  ;;  %s81_s7 = sadd.s32 1, %s693_s11 }
  0x27   : > { %p88_p4 = scmp.ne.s32.totalorder %s693_s11, %s689_s10  ;;  %p89_p5 = scmp.eq.s32.totalorder %s705_s14, 0 }
  0x28   : > { %s920_s22 = smov (%p44_p1, %s42_s22), 0  ;;  %p539_p9 = scmp.lt.s32.totalorder %s705_s14, 3 }
  0x29   : > { %p90_p8 = por %p89_p5, %p88_p4  ;;  %s74_s8 = ssub.s32 %s701_s13, %s920_s22 }
  0x2a   : > { %s165_s9 = sand.u32 1, %s693_s11   ;;  %p79_p10 = scmp.eq.s32.totalorder %s74_s8, 0 }
  0x2b   : > { %s485_s15 = sshll.u32 %s165_s9, 5  ;;  %s497_s19 = sshll.u32 %s701_s13, 9 }
  0x2c   : > { %s813_s21 = scalar_select %p79_p10, %s693_s11, %s81_s7  }
  0x2d   : > { %s818_s20 = scalar_lea.hbm %s900_s1, %s497_s19  ;;  %s169_s25 = scalar_lea.vmem [#allocation5], %s485_s15 }
  0x2e   : > { %s179_s26 = sshll.u32 %s169_s25, 4  ;;  %p820_p7 = pnand %p539_p9, %p90_p8  ;;  %s824_s26 = int_to_ptr.vmem [resolvable:$true] %s179_s26 }
  0x2f   : > { %s826_s28 = scalar_lea.sflag [#allocation6], %s165_s9  ;;  %s621_s29 = scalar_lea.hbm %s818_s20, 512 }
  0x30   : > { %p622_p11 = scmp.ne.s32.totalorder %s818_s20, %s621_s29  ;;  %p623_p12 = pneg %p820_p7 }
  0x31   : > { %s626_s6 = scalar_lea.hbm %s900_s1, 1536  ;;  %p627_p2 = scmp.lt.u32.totalorder %s818_s20, %s900_s1 }
  0x32   : > { %p624_p13 = pnand %p623_p12, %p622_p11  ;;  %p628_p3 = scmp.lt.u32.totalorder %s626_s6, %s621_s29 }
  0x33   : > { %p630_p1 = scmp.lt.u32.totalorder %s621_s29, %s818_s20 }
  0x34   : > { %p625_p0 = pneg %p624_p13  ;;  %p629_p6 = por %p628_p3, %p627_p2 }
  0x36   : > { %p631_p4 = por %p630_p1, %p629_p6 }
  0x38   : > { %p632_p5 = pnand %p631_p4, %p625_p0 }
  0x3a   : > { %635 = shalt.err (!%p632_p5)
}
  0x3b   : > { %s636_s9 = scalar_lea.vmem %s824_s26, 512  ;;  %s710_s15 = smov [#allocation5]  }
  0x3c   : > { %p637_p8 = scmp.ne.s32.totalorder %s824_s26, %s636_s9  ;;  %s641_s19 = sshll.u32 %s710_s15, 4  ;;  %s642_s19 = int_to_ptr.vmem [resolvable:$false] %s641_s19 }
  0x3d   : > { %s643_s23 = scalar_lea.vmem %s642_s19, 1024  ;;  %p644_p11 = scmp.lt.s32.totalorder %s824_s26, %s642_s19 }
  0x3e   : > { %p639_p9 = pnand %p637_p8, %p623_p12  ;;  %p645_p13 = scmp.lt.s32.totalorder %s643_s23, %s636_s9 }
  0x40   : > { %p640_p10 = pneg %p639_p9  ;;  %p646_p2 = por %p645_p13, %p644_p11 }
  0x42   : > { %p647_p3 = pnand %p646_p2, %p640_p10 }
  0x44   : > { %650 = shalt.err (!%p647_p3)
}
  0x45   : > { %537 = dma.hbm_to_vmem [thread:$0]  (!%p820_p7), %s818_s20, 512, %s824_s26, %s826_s28, %s708_s3, %s708_s3, %s709_s4  }
  0x46   : > { %p911_p12 = scmp.ne.s32.totalorder %s908_s18, 0 }
  0x47   : > { %p912_p0 = scmp.ne.s32.totalorder (!%p911_p12), %s906_s16, 0 }
  0x48   : > { %191 = sbr.rel (%p911_p12) target bundleno = 319 (0x13f), region = 28 }
  0x4f   : > { %676 = dma.done.wait (%p912_p0), [#allocation4], 256  }
  0x50   : > { %678 = vsyncadd (%p912_p0), [#allocation4], 4294967040  ;;  %s197_s24 = sand.u32 1, %s689_s10   ;;  %p913_p6 = scmp.ne.s32.totalorder %s907_s17, 0 }
  0x51   : > { %s490_s25 = sshll.u32 %s197_s24, 5  ;;  %s198_s27 = scalar_lea.sflag [#allocation6], %s197_s24 }
  0x52   : > { %s201_s29 = scalar_lea.vmem [#allocation5], %s490_s25 }
  0x53   : > { %680 = dma.done.wait (%p913_p6), %s198_s27, 512  }
  0x54   : > { %682 = vsyncadd (%p913_p6), %s198_s27, 4294966784  ;;  %vm248_vm0 = vcmask 261120   ;;  %v711_v0 = vmov 0.0   ;;  %v255_v1 = vld [vmem:[%s201_s29] sm:$0xff]  ;;  %v256_v2 = vld [vmem:[%s201_s29 + $0x8] sm:$0xff]  ;;  %p232_p7 = scmp.lt.s32.totalorder %s697_s12, 2 }
  0x55   : > { %250 = vst.msk [vmem:[#allocation2 + $0x8] sm:$0xff] %vm248_vm0, %v711_v0  ;;  %249 = vst.msk [vmem:[#allocation2] sm:$0xff] %vm248_vm0, %v711_v0  ;;  %v257_v3 = vld [vmem:[%s201_s29 + $0x10] sm:$0xff]  ;;  %v516_v4 = vpack.c.bf16 %v256_v2, %v255_v1  ;;  %v258_v5 = vld [vmem:[%s201_s29 + $0x18] sm:$0xff] }
  0x56   : > { %v253_v6 = vld [vmem:[#allocation3] sm:$0xff]  ;;  %v520_v7 = vpack.c.bf16 %v258_v5, %v257_v3  ;;  %v254_v8 = vld [vmem:[#allocation3 + $0x8] sm:$0xff]  ;;  %s922_s12 = smov (!%p232_p7, %s697_s12), 2 }
  0x57   : > { %513 = vmatprep.mubr.msk.f32.mxu0 %vm248_vm0, %v253_v6  ;;  %517 = vmatprep.subr.bf16.mxu0 %v516_v4  ;;  %s498_s16 = sshll.u32 %s922_s12, 4 }
  0x58   : > { %519 = vmatpush3.bf16.msra.mxu0 %v516_v4  ;;  %s242_s3 = scalar_lea.vmem %s901_s2, %s498_s16 }
  0x59   : > { %521 = vmatprep.subr.bf16.mxu0 %v520_v7 }
  0x5c   : > { %523 = vmatpush3.bf16.msra.mxu0 %v520_v7  ;;  %v252_v9 = vld [vmem:[#allocation2 + $0x8] sm:$0xff]  ;;  %v251_v10 = vld [vmem:[#allocation2] sm:$0xff] }
  0x5f   : > { %514 = vmatmul.mubr.msk.f32.vlgmr.msra.gmra.mrb[0].mxu0 %vm248_vm0, %v254_v8 }
 0x132   : > { %v515_v11 = vpop.f32.mrb[0].mxu0 }
 0x133   : > { %v342_v12 = vadd.f32 %v515_v11, %v252_v9  ;;  %v332_v13 = vpop.f32.mrb[1].mxu0 }
 0x134   : > { %v341_v14 = vadd.f32 %v332_v13, %v251_v10 }
 0x135   : > { %344 = vst.msk [vmem:[#allocation2 + $0x8] sm:$0xff] %vm248_vm0, %v342_v12 }
 0x136   : > { %343 = vst.msk [vmem:[#allocation2] sm:$0xff] %vm248_vm0, %v341_v14 }
 0x13c   : > { %v349_v15 = vld [vmem:[#allocation2 + $0x8] sm:$0xff] }
 0x13d   : > { %351 = vst.msk [vmem:[%s242_s3 + $0x8] sm:$0xff] %vm248_vm0, %v349_v15  ;;  %v348_v16 = vld [vmem:[#allocation2] sm:$0xff] }
 0x13e   : > { %350 = vst.msk [vmem:[%s242_s3] sm:$0xff] %vm248_vm0, %v348_v16 }
 0x13f PF: > { %s16_s14 = sadd.s32 1, %s705_s14   ;;  %s914_s9 = smov %s689_s10 }
 0x140   : > { %p13_p1 = scmp.ge.s32.totalorder %s16_s14, 5   ;;  %s915_s10 = smov %s693_s11 }
 0x141   : > { %s916_s11 = smov %s813_s21  ;;  %s917_s12 = smov %s701_s13 }
 0x142   : > { %s918_s13 = smov %s920_s22  ;;  %15 = sbr.rel (!%p13_p1) target bundleno = 5 (0x5), region = 82 }
 0x149   :  { %388 = vsyncpa [#allocation4], 1 }
 0x14a   :  { %390 = vsyncpa [#allocation4 + $0x1], 1 }
 0x14b   :  { %391 = vsyncpa [#allocation6], 1 }
 0x14c   :  { %393 = vsyncpa [#allocation6 + $0x1], 1 }

// kernel: joint_attention_forward.7
= control target key start
LH: loop header
LB: loop body
LE: loop exit
PB: predicated region body
PF: predicated region fallthrough
CT: control target
= control target key end

     0   :  { %s2216_s12 = smov 0   ;;  %s2218_s13 = smov 0   ;;  %s2770_s0 = inlined_call_operand.vmem [shape: f32[3,2,24,32], index: 0, kind: input, shape index: {}, may-alias: {0,1,2}]   ;;  %s2771_s1 = inlined_call_operand.vmem [shape: f32[3,2,24,32], index: 1, kind: input, shape index: {}, may-alias: {0,1,2}]   ;;  %s2772_s2 = inlined_call_operand.vmem [shape: f32[3,2,24,32], index: 2, kind: input, shape index: {}, may-alias: {0,1,2}]   ;;  %s2773_s3 = inlined_call_operand.vmem [shape: f32[2,24,32], index: 3, kind: output, shape index: {}]  }
   0x1   :  { %s2220_s14 = smov 0  }
   0x2 LB: > { %s32_s15 = sadd.s32 1, %s2176_s13  ;;  %p1769_p0 = scmp.ge.s32.totalorder %s2180_s14, 1  ;;  %s2180_s14 = sphi %s2220_s14, %s13_s14   ;;  %s2176_s13 = sphi %s2218_s13, %s2777_s13   ;;  %s2172_s12 = sphi %s2216_s12, %s2776_s12  }
   0x3   : > { %p34_p1 = scmp.ge.s32.totalorder %s32_s15, 2  ;;  %p201_p2 = scmp.lt.s32.totalorder %s2180_s14, 3 }
   0x5   : > { %s2779_s15 = smov (%p34_p1, %s32_s15), 0  ;;  %p202_p3 = pnand %p1769_p0, %p201_p2 }
   0x6   : > { %p254_p4 = scmp.lt.s32.totalorder (!%p202_p3), %s2172_s12, 1  ;;  %v2182_v0 = vmov (!%p202_p3), 0.0|0.0   ;;  %vm2183_vm0 = vmmov (!%p202_p3), 0   ;;  %v2184_v1 = vmov (!%p202_p3), 0.0   ;;  %vm321_vm1 = vcmask (!%p202_p3), 64512   ;;  %s2187_s26 = smov (!%p202_p3), 120  }
   0x7   : > { %205 = sbr.rel (%p202_p3) target bundleno = 1963 (0x7ab), region = 32  ;;  %1986 = vmatprep.subr.bf16.mxu0 (!%p202_p3), %v2182_v0  ;;  %1872 = vmatprep.mubr.msk.f32.mxu0 (!%p202_p3), %vm2183_vm0, %v2184_v1  ;;  %vm2252_vm2 = vmpackc.low (!%p202_p3), %vm321_vm1, %vm321_vm1  ;;  %vm299_vm3 = vcmask (!%p202_p3), 261120   ;;  %v2185_v13 = vmov (!%p202_p3), -inf   ;;  %vm426_vm4 = vcmask (!%p202_p3), 195584   ;;  %v2186_v23 = vmov (!%p202_p3), 0   ;;  %s2188_s27 = smov (!%p202_p3), 112  }
   0x8   : > { %1990 = vmatprep.subr.bf16.mxu1 (!%p202_p3), %v2182_v0  ;;  %1887 = vmatprep.mubr.msk.f32.mxu1 (!%p202_p3), %vm2183_vm0, %v2184_v1  ;;  %300 = vst.msk [vmem:[#allocation2] sm:$0xff] (!%p202_p3), %vm299_vm3, %v2185_v13  ;;  %301 = vst.msk [vmem:[#allocation2 + $0x8] sm:$0xff] (!%p202_p3), %vm299_vm3, %v2185_v13  ;;  %s2189_s28 = smov (!%p202_p3), 104   ;;  %vm931_vm5 = vcmask (!%p202_p3), 130112   ;;  %vm1260_vm6 = vcmask (!%p202_p3), 195712   ;;  %vm1589_vm7 = vcmask (!%p202_p3), 261312  }
   0x9   : > { %302 = vst.msk [vmem:[#allocation2 + $0x10] sm:$0xff] (!%p202_p3), %vm299_vm3, %v2185_v13  ;;  %303 = vst.msk [vmem:[#allocation3] sm:$0xff] (!%p202_p3), %vm299_vm3, %v2184_v1  ;;  %2053 = vset.pattern.permute.xlu1 (!%p202_p3), %v2186_v23  ;;  %2054 = vset.pattern.permute.xlu0 (!%p202_p3), %v2186_v23  ;;  %s2193_s29 = smov (!%p202_p3), 8   ;;  %s2194_s30 = smov (!%p202_p3), 16  }
   0xa   : > { %304 = vst.msk [vmem:[#allocation3 + $0x8] sm:$0xff] (!%p202_p3), %vm299_vm3, %v2184_v1  ;;  %305 = vst.msk [vmem:[#allocation3 + $0x10] sm:$0xff] (!%p202_p3), %vm299_vm3, %v2184_v1  ;;  %s2195_s4 = smov (!%p202_p3), 24  }
   0xb   : > { %306 = vst.msk [vmem:[#allocation4] sm:$0xff] (!%p202_p3), %vm299_vm3, %v2184_v1  ;;  %307 = vst.msk [vmem:[#allocation4 + $0x8] sm:$0xff] (!%p202_p3), %vm299_vm3, %v2184_v1 }
   0xc   : > { %308 = vst.msk [vmem:[#allocation4 + $0x10] sm:$0xff] (!%p202_p3), %vm299_vm3, %v2184_v1 }
   0xe   : > { %s2781_s12 = smov (!%p254_p4, %s2172_s12), 1 }
   0xf   : > { %s2240_s16 = smul.u32 24, %s2781_s12  ;;  %v2308_v24 = vld [vmem:[#allocation2] sm:$0xff]  ;;  %v2313_v27 = vld [vmem:[#allocation2 + $0x8] sm:$0xff] }
  0x10   : > { %v2327_v32 = vld [vmem:[#allocation2 + $0x10] sm:$0xff] }
  0x11   : > { %s1702_s19 = scalar_lea.vmem %s2771_s1, %s2240_s16  ;;  %s261_s22 = scalar_lea.vmem %s2770_s0, %s2240_s16 }
  0x12   : > { %v2246_v2 = vld [vmem:[%s1702_s19 + $0x30] sm:$0xff]  ;;  %v2248_v3 = vld [vmem:[%s1702_s19 + $0x38] sm:$0xff]  ;;  %v309_v6 = vld [vmem:[%s261_s22] sm:$0xff]  ;;  %s1707_s25 = scalar_lea.vmem %s2772_s2, %s2240_s16  ;;  %s293_s7 = scalar_lea.vmem %s2773_s3, %s2240_s16 }
  0x13   : > { %v1987_v5 = vpack.c.bf16 %v2248_v3, %v2246_v2  ;;  %v2265_v7 = vld [vmem:[%s1702_s19 + $0x40] sm:$0xff]  ;;  %v2267_v8 = vmul.f32 0.35355338, %v309_v6  ;;  %v310_v9 = vld [vmem:[%s261_s22 + $0x8] sm:$0xff]  ;;  %v311_v11 = vld [vmem:[%s261_s22 + $0x10] sm:$0xff]  ;;  %v2055_v36 = vpack.i.bf16 %v2248_v3, %v2246_v2 }
  0x14   : > { %v2274_v10 = vmul.f32 0.35355338, %v310_v9  ;;  %v2280_v12 = vmul.f32 0.35355338, %v311_v11  ;;  %v2323_v30 = vld [vmem:[%s1707_s25 + $0x60] sm:$0xff]  ;;  %v2325_v31 = vld [vmem:[%s1707_s25 + $0x68] sm:$0xff] }
  0x15   : > { %1989 = vmatpush3.bf16.xpose.msk.msra.mxu0 %vm2252_vm2, %v1987_v5  ;;  %v1991_v33 = vpack.c.bf16 %v2325_v31, %v2323_v30  ;;  %v2339_v37 = vld [vmem:[%s1707_s25 + $0x70] sm:$0xff] }
  0x16   : > { %1870 = vmatprep.subr.mxu0 %v2184_v1 }
  0x17   : > { %1992 = vmatpush3.bf16.msra.mxu1 %v1991_v33 }
  0x18   : > { %1885 = vmatprep.subr.mxu1 %v2184_v1 }
  0x1b   : > { %1886 = vmatpush3.msra.mxu1 %v2339_v37 }
  0x1c   : > { %1993 = vmatprep.subr.bf16.mxu1 %v2182_v0 }
  0x1d   : > { %1871 = vmatpush3.xpose.msk.msra.mxu0 %vm321_vm1, %v2265_v7 }
  0x1e   : > { %1997 = vmatprep.subr.bf16.mxu0 %v2182_v0 }
  0x20   : > { %1873 = vmatmul.mubr.msk.f32.vlgmr.msra.gmra.mrb[0].mxu0 %vm321_vm1, %v2267_v8 }
  0x21   : > { %1875 = vmatprep.mubr.msk.f32.mxu0 %vm2183_vm0, %v2184_v1 }
  0x24   : > { %1876 = vmatmul.mubr.msk.f32.gmra.mrb[2].mxu0 %vm321_vm1, %v2274_v10 }
  0x25   : > { %1878 = vmatprep.mubr.msk.f32.mxu0 %vm2183_vm0, %v2184_v1 }
  0x28   : > { %1879 = vmatmul.mubr.msk.f32.gmra.mrb[4].mxu0 %vm321_vm1, %v2280_v12 }
  0x29   : > { %1917 = vmatprep.mubr.msk.f32.mxu0 %vm2183_vm0, %v2184_v1 }
  0xf3   : > { %v406_v14 = vpop.f32.mrb[0].mxu0 }
  0xf4   : > { %v1874_v15 = vpop.f32.mrb[1].mxu0  ;;  %v427_v16 = vsel %vm426_vm4, %v406_v14, -inf }
  0xf5   : > { %428 = vmax.xlane.f32.xlu0 %v427_v16 }
  0xf7   : > { %v411_v17 = vpop.f32.mrb[2].mxu0 }
  0xf8   : > { %v1877_v18 = vpop.f32.mrb[3].mxu0  ;;  %v430_v19 = vsel %vm426_vm4, %v411_v17, -inf }
  0xf9   : > { %431 = vmax.xlane.f32.xlu0 %v430_v19 }
  0xfb   : > { %v416_v20 = vpop.f32.mrb[4].mxu0 }
  0xfc   : > { %v1880_v21 = vpop.f32.mrb[5].mxu0  ;;  %v433_v22 = vsel %vm426_vm4, %v416_v20, -inf }
  0xfd   : > { %434 = vmax.xlane.f32.xlu1 %v433_v22 }
 0x182   : > { %v429_v25 = vpop.xlane.xlu0 %428 }
 0x183   : > { %v2311_v26 = vmax.f32 %v2308_v24, %v429_v25 }
 0x185   : > { %450 = vperm.xlu1 %2053, %v2311_v26  }
 0x186   : > { %v432_v28 = vpop.xlane.xlu0 %431 }
 0x187   : > { %v2321_v29 = vmax.f32 %v2313_v27, %v432_v28 }
 0x189   : > { %455 = vperm.xlu0 %2054, %v2321_v29  }
 0x18a   : > { %v435_v34 = vpop.xlane.xlu1 %434 }
 0x18b   : > { %v2333_v35 = vmax.f32 %v2327_v32, %v435_v34 }
 0x18d   : > { %460 = vperm.xlu1 %2053, %v2333_v35   ;;  %956 = vrot.lane.b32.xlu0 %v2267_v8, %s2188_s27 }
 0x191   : > { %2056 = vrot.lane.b32.xlu1 %v2055_v36, %s2187_s26  ;;  %960 = vrot.lane.b32.xlu0 %v2280_v12, %s2188_s27 }
 0x195   : > { %634 = vrot.lane.b32.xlu1 %v2265_v7, %s2187_s26  ;;  %1295 = vrot.lane.b32.xlu0 %v2265_v7, %s2189_s28 }
 0x199   : > { %624 = vrot.lane.b32.xlu1 %v2267_v8, %s2187_s26  ;;  %1287 = vrot.lane.b32.xlu0 %v2274_v10, %s2189_s28 }
 0x19d   : > { %626 = vrot.lane.b32.xlu1 %v2274_v10, %s2187_s26 }
 0x1a1   : > { %628 = vrot.lane.b32.xlu1 %v2280_v12, %s2187_s26 }
 0x1a5   : > { %2061 = vrot.lane.b32.xlu1 %v2055_v36, %s2188_s27 }
 0x1a9   : > { %966 = vrot.lane.b32.xlu1 %v2265_v7, %s2188_s27 }
 0x1ad   : > { %958 = vrot.lane.b32.xlu1 %v2274_v10, %s2188_s27 }
 0x1b1   : > { %2066 = vrot.lane.b32.xlu1 %v2055_v36, %s2189_s28  ;;  %v2190_v36 = vmov 8  }
 0x1b2   : > { %2070 = vset.pattern.permute.xlu0 %v2190_v36  ;;  %2071 = vset.pattern.permute.xlu1 %v2190_v36 }
 0x1b5   : > { %1285 = vrot.lane.b32.xlu1 %v2267_v8, %s2189_s28 }
 0x1b9   : > { %1289 = vrot.lane.b32.xlu1 %v2280_v12, %s2189_s28 }
 0x204   : > { %v451_v38 = vpop.permute.xlu1 %450 }
 0x205   : > { %v463_v39 = vsub.f32 %v406_v14, %v451_v38  ;;  %603 = vst.msk [vmem:[#allocation2] sm:$0xff] %vm321_vm1, %v451_v38 }
 0x207   : > { %v466_v40 = vmul.f32 1.442695, %v463_v39 }
 0x208   : > { %v456_v41 = vpop.permute.xlu0 %455 }
 0x209   : > { %2104 = vpow2.f32 %v466_v40  ;;  %v464_v42 = vsub.f32 %v411_v17, %v456_v41  ;;  %604 = vst.msk [vmem:[#allocation2 + $0x8] sm:$0xff] %vm321_vm1, %v456_v41 }
 0x20b   : > { %v468_v43 = vmul.f32 1.442695, %v464_v42 }
 0x20c   : > { %v461_v44 = vpop.permute.xlu1 %460  ;;  %v957_v63 = vpop.permute.xlu0 %956 }
 0x20d   : > { %2106 = vpow2.f32 %v468_v43  ;;  %v465_v45 = vsub.f32 %v416_v20, %v461_v44  ;;  %605 = vst.msk [vmem:[#allocation2 + $0x10] sm:$0xff] %vm321_vm1, %v461_v44 }
 0x20f   : > { %v470_v46 = vmul.f32 1.442695, %v465_v45 }
 0x210   : > { %v2057_v47 = vpop.permute.xlu1 %2056  ;;  %v961_v3 = vpop.permute.xlu0 %960 }
 0x211   : > { %2108 = vpow2.f32 %v470_v46  ;;  %v2059_v48 = vunpack.i.h.bf16 %v2057_v47  ;;  %v2058_v49 = vunpack.i.l.bf16 %v2057_v47 }
 0x213   : > { %v2373_v50 = vpop.eup %2104  ;;  %v1994_v51 = vpack.c.bf16 %v2059_v48, %v2058_v49  ;;  %v2462_v48 = vld [vmem:[#allocation2] sm:$0xff] }
 0x214   : > { %1888 = vmatmul.mubr.msk.f32.vlgmr.msra.gmra.mrb[0].mxu1 %vm426_vm4, %v2373_v50  ;;  %v635_v52 = vpop.permute.xlu1 %634  ;;  %v1296_v9 = vpop.permute.xlu0 %1295 }
 0x215   : > { %1996 = vmatpush3.bf16.xpose.msk.msra.mxu1 %vm2252_vm2, %v1994_v51  ;;  %1890 = vmatprep.mubr.msk.f32.mxu1 %vm2183_vm0, %v2184_v1 }
 0x216   : > { %1900 = vmatprep.subr.mxu1 %v2184_v1 }
 0x217   : > { %v2382_v53 = vpop.eup %2106 }
 0x218   : > { %1891 = vmatmul.mubr.msk.f32.gmra.mrb[2].mxu1 %vm426_vm4, %v2382_v53  ;;  %v625_v54 = vpop.permute.xlu1 %624  ;;  %v1288_v11 = vpop.permute.xlu0 %1287 }
 0x219   : > { %1893 = vmatprep.mubr.msk.f32.mxu1 %vm2183_vm0, %v2184_v1 }
 0x21b   : > { %v2388_v55 = vpop.eup %2108 }
 0x21c   : > { %1894 = vmatmul.mubr.msk.f32.gmra.mrb[4].mxu1 %vm426_vm4, %v2388_v55  ;;  %v627_v56 = vpop.permute.xlu1 %626 }
 0x21d   : > { %1901 = vmatpush3.xpose.msk.msra.mxu1 %vm321_vm1, %v635_v52  ;;  %1902 = vmatprep.mubr.msk.f32.mxu1 %vm2183_vm0, %v2184_v1  ;;  %v2468_v52 = vld [vmem:[#allocation2 + $0x8] sm:$0xff] }
 0x21e   : > { %2000 = vmatprep.subr.bf16.mxu1 %v2182_v0 }
 0x220   : > { %1903 = vmatmul.mubr.msk.f32.vlgmr.msra.gmra.mrb[6].mxu1 %vm321_vm1, %v625_v54  ;;  %v629_v57 = vpop.permute.xlu1 %628 }
 0x221   : > { %1905 = vmatprep.mubr.msk.f32.mxu1 %vm2183_vm0, %v2184_v1 }
 0x224   : > { %1906 = vmatmul.mubr.msk.f32.gmra.mrb[8].mxu1 %vm321_vm1, %v627_v56  ;;  %v2062_v58 = vpop.permute.xlu1 %2061 }
 0x225   : > { %1908 = vmatprep.mubr.msk.f32.mxu1 %vm2183_vm0, %v2184_v1  ;;  %v2064_v59 = vunpack.i.h.bf16 %v2062_v58  ;;  %v2063_v60 = vunpack.i.l.bf16 %v2062_v58 }
 0x227   : > { %v2001_v61 = vpack.c.bf16 %v2064_v59, %v2063_v60  ;;  %v2191_v60 = vmov 16  }
 0x228   : > { %1909 = vmatmul.mubr.msk.f32.gmra.mrb[10].mxu1 %vm321_vm1, %v629_v57  ;;  %v967_v62 = vpop.permute.xlu1 %966  ;;  %v2474_v57 = vld [vmem:[#allocation2 + $0x10] sm:$0xff] }
 0x229   : > { %2003 = vmatpush3.bf16.xpose.msk.msra.mxu1 %vm2252_vm2, %v2001_v61  ;;  %1932 = vmatprep.mubr.msk.f32.mxu1 %vm2183_vm0, %v2184_v1 }
 0x22a   : > { %1930 = vmatprep.subr.mxu1 %v2184_v1 }
 0x22c   : > { %v959_v2 = vpop.permute.xlu1 %958 }
 0x230   : > { %v2067_v5 = vpop.permute.xlu1 %2066 }
 0x231   : > { %1931 = vmatpush3.xpose.msk.msra.mxu1 %vm321_vm1, %v967_v62  ;;  %v2069_v6 = vunpack.i.h.bf16 %v2067_v5  ;;  %v2068_v7 = vunpack.i.l.bf16 %v2067_v5 }
 0x232   : > { %2007 = vmatprep.subr.bf16.mxu1 %v2182_v0 }
 0x233   : > { %v2008_v8 = vpack.c.bf16 %v2069_v6, %v2068_v7 }
 0x234   : > { %1933 = vmatmul.mubr.msk.f32.vlgmr.msra.gmra.mrb[12].mxu1 %vm321_vm1, %v957_v63  ;;  %v1286_v10 = vpop.permute.xlu1 %1285 }
 0x235   : > { %1935 = vmatprep.mubr.msk.f32.mxu1 %vm2183_vm0, %v2184_v1  ;;  %2010 = vmatpush3.bf16.xpose.msk.msra.mxu1 %vm2252_vm2, %v2008_v8 }
 0x236   : > { %1960 = vmatprep.subr.mxu1 %v2184_v1 }
 0x238   : > { %1936 = vmatmul.mubr.msk.f32.gmra.mrb[14].mxu1 %vm321_vm1, %v959_v2  ;;  %v1290_v12 = vpop.permute.xlu1 %1289 }
 0x239   : > { %1938 = vmatprep.mubr.msk.f32.mxu1 %vm2183_vm0, %v2184_v1 }
 0x23c   : > { %1939 = vmatmul.mubr.msk.f32.gmra.mrb[16].mxu1 %vm321_vm1, %v961_v3 }
 0x23d   : > { %1962 = vmatprep.mubr.msk.f32.mxu1 %vm2183_vm0, %v2184_v1  ;;  %1961 = vmatpush3.xpose.msk.msra.mxu1 %vm321_vm1, %v1296_v9 }
 0x240   : > { %1963 = vmatmul.mubr.msk.f32.vlgmr.msra.gmra.mrb[18].mxu1 %vm321_vm1, %v1286_v10 }
 0x241   : > { %1965 = vmatprep.mubr.msk.f32.mxu1 %vm2183_vm0, %v2184_v1 }
 0x244   : > { %1966 = vmatmul.mubr.msk.f32.gmra.mrb[20].mxu1 %vm321_vm1, %v1288_v11 }
 0x245   : > { %1968 = vmatprep.mubr.msk.f32.mxu1 %vm2183_vm0, %v2184_v1 }
 0x248   : > { %1969 = vmatmul.mubr.msk.f32.gmra.mrb[22].mxu1 %vm321_vm1, %v1290_v12 }
 0x2e7   : > { %v2430_v4 = vpop.f32.mrb[0].mxu1 }
 0x2e8   : > { %v1889_v13 = vpop.f32.mrb[1].mxu1 }
 0x2eb   : > { %v2432_v14 = vpop.f32.mrb[2].mxu1 }
 0x2ec   : > { %v1892_v15 = vpop.f32.mrb[3].mxu1 }
 0x2ef   : > { %v2434_v16 = vpop.f32.mrb[4].mxu1 }
 0x2f0   : > { %v1895_v17 = vpop.f32.mrb[5].mxu1 }
 0x2f3   : > { %v2436_v18 = vpop.f32.mrb[6].mxu1 }
 0x2f4   : > { %v734_v19 = vsel %vm426_vm4, %v2436_v18, -inf  ;;  %v1904_v20 = vpop.f32.mrb[7].mxu1 }
 0x2f5   : > { %735 = vmax.xlane.f32.xlu0 %v734_v19 }
 0x2f7   : > { %v2440_v21 = vpop.f32.mrb[8].mxu1 }
 0x2f8   : > { %v737_v22 = vsel %vm426_vm4, %v2440_v21, -inf  ;;  %v1907_v25 = vpop.f32.mrb[9].mxu1 }
 0x2f9   : > { %738 = vmax.xlane.f32.xlu1 %v737_v22  ;;  %v2192_v22 = vmov 24  }
 0x2fb   : > { %v2444_v28 = vpop.f32.mrb[10].mxu1 }
 0x2fc   : > { %v740_v33 = vsel %vm426_vm4, %v2444_v28, -inf  ;;  %v1910_v34 = vpop.f32.mrb[11].mxu1 }
 0x2fd   : > { %741 = vmax.xlane.f32.xlu0 %v740_v33  ;;  %v478_v34 = vsel %vm426_vm4, %v2382_v53, 0.0  ;;  %v475_v53 = vsel %vm426_vm4, %v2373_v50, 0.0 }
 0x307   : > { %v2450_v38 = vpop.f32.mrb[12].mxu1 }
 0x308   : > { %v1066_v39 = vsel %vm426_vm4, %v2450_v38, -inf  ;;  %v1934_v40 = vpop.f32.mrb[13].mxu1 }
 0x309   : > { %1067 = vmax.xlane.f32.xlu1 %v1066_v39  ;;  %v481_v39 = vsel %vm426_vm4, %v2388_v55, 0.0 }
 0x30b   : > { %v2454_v41 = vpop.f32.mrb[14].mxu1 }
 0x30c   : > { %v1069_v42 = vsel %vm426_vm4, %v2454_v41, -inf  ;;  %v1937_v43 = vpop.f32.mrb[15].mxu1 }
 0x30d   : > { %1070 = vmax.xlane.f32.xlu1 %v1069_v42 }
 0x30f   : > { %v2458_v44 = vpop.f32.mrb[16].mxu1 }
 0x310   : > { %v1940_v45 = vpop.f32.mrb[17].mxu1  ;;  %v1072_v3 = vsel %vm426_vm4, %v2458_v44, -inf }
 0x311   : > { %v2074_v45 = vpack.i.bf16 %v2325_v31, %v2323_v30 }
 0x313   : > { %v2460_v46 = vpop.f32.mrb[18].mxu1 }
 0x314   : > { %v1964_v47 = vpop.f32.mrb[19].mxu1  ;;  %v1395_v5 = vsel %vm426_vm4, %v2460_v46, -inf }
 0x317   : > { %v2482_v61 = vpop.f32.mrb[20].mxu1 }
 0x318   : > { %v1967_v62 = vpop.f32.mrb[21].mxu1  ;;  %v1398_v33 = vsel %vm426_vm4, %v2482_v61, -inf }
 0x319   : > { %v441_v62 = vsub.f32 %v2327_v32, %v2333_v35  ;;  %v424_v32 = vld [vmem:[#allocation3 + $0x8] sm:$0xff] }
 0x31b   : > { %v2484_v63 = vpop.f32.mrb[22].mxu1 }
 0x31c   : > { %v1970_v2 = vpop.f32.mrb[23].mxu1  ;;  %v1401_v25 = vsel %vm426_vm4, %v2484_v63, -inf }
 0x31d   : > { %v446_v2 = vmul.f32 1.442695, %v441_v62 }
 0x382   : > { %v736_v49 = vpop.xlane.xlu0 %735 }
 0x383   : > { %v2465_v51 = vmax.f32 %v2462_v48, %v736_v49 }
 0x385   : > { %757 = vperm.xlu0 %2070, %v2465_v51  }
 0x386   : > { %v739_v54 = vpop.xlane.xlu1 %738 }
 0x387   : > { %v2471_v56 = vmax.f32 %v2468_v52, %v739_v54 }
 0x389   : > { %762 = vperm.xlu1 %2071, %v2471_v56  }
 0x38a   : > { %v742_v58 = vpop.xlane.xlu0 %741 }
 0x38b   : > { %v2477_v59 = vmax.f32 %v2474_v57, %v742_v58 }
 0x38d   : > { %767 = vperm.xlu0 %2070, %v2477_v59   ;;  %2072 = vset.pattern.permute.xlu1 %v2191_v60 }
 0x391   : > { %2073 = vset.pattern.permute.xlu0 %v2191_v60 }
 0x396   : > { %v1068_v6 = vpop.xlane.xlu1 %1067 }
 0x39a   : > { %v1071_v7 = vpop.xlane.xlu1 %1070 }
 0x3ac   : > { %1073 = vmax.xlane.f32.xlu0 %v1072_v3 }
 0x3ad   : > { %1396 = vmax.xlane.f32.xlu1 %v1395_v5 }
 0x404   : > { %v2490_v8 = vpop.permute.xlu0 %757 }
 0x405   : > { %v770_v9 = vsub.f32 %v2436_v18, %v2490_v8  ;;  %935 = vst.msk [vmem:[#allocation2] sm:$0xff] %vm931_vm5, %v2490_v8 }
 0x408   : > { %v2496_v10 = vpop.permute.xlu1 %762 }
 0x409   : > { %v771_v11 = vsub.f32 %v2440_v21, %v2496_v10  ;;  %936 = vst.msk [vmem:[#allocation2 + $0x8] sm:$0xff] %vm931_vm5, %v2496_v10 }
 0x40c   : > { %v2502_v12 = vpop.permute.xlu0 %767  ;;  %v2504_v13 = vld [vmem:[#allocation2] sm:$0xff] }
 0x40d   : > { %v772_v15 = vsub.f32 %v2444_v28, %v2502_v12  ;;  %937 = vst.msk [vmem:[#allocation2 + $0x10] sm:$0xff] %vm931_vm5, %v2502_v12  ;;  %v2511_v17 = vmax.f32 %v2504_v13, %v1068_v6 }
 0x40f   : > { %1089 = vperm.xlu1 %2072, %v2511_v17   ;;  %v777_v21 = vmul.f32 1.442695, %v772_v15 }
 0x410   : > { %v2514_v19 = vld [vmem:[#allocation2 + $0x8] sm:$0xff] }
 0x411   : > { %v2517_v20 = vmax.f32 %v2514_v19, %v1071_v7 }
 0x413   : > { %1094 = vperm.xlu0 %2073, %v2517_v20  }
 0x414   : > { %v2529_v42 = vld [vmem:[#allocation2 + $0x10] sm:$0xff] }
 0x417   : > { %2084 = vset.pattern.permute.xlu0 %v2192_v22 }
 0x432   : > { %1402 = vmax.xlane.f32.xlu0 %v1401_v25 }
 0x433   : > { %1399 = vmax.xlane.f32.xlu1 %v1398_v33 }
 0x436   : > { %479 = vadd.xlane.f32.xlu0 %v478_v34 }
 0x439   : > { %v1074_v40 = vpop.xlane.xlu0 %1073 }
 0x43a   : > { %482 = vadd.xlane.f32.xlu0 %v481_v39  ;;  %v2532_v43 = vmax.f32 %v2529_v42, %v1074_v40  ;;  %v1397_v55 = vpop.xlane.xlu1 %1396  ;;  %v425_v40 = vld [vmem:[#allocation3 + $0x10] sm:$0xff] }
 0x444   : > { %1099 = vperm.xlu1 %2072, %v2532_v43  }
 0x448   : > { %2085 = vset.pattern.permute.xlu1 %v2192_v22 }
 0x450   : > { %2075 = vrot.lane.b32.xlu0 %v2074_v45, %s2187_s26 }
 0x468   : > { %476 = vadd.xlane.f32.xlu1 %v475_v53 }
 0x479   : > { %801 = vrot.lane.b32.xlu1 %v2339_v37, %s2187_s26 }
 0x47d   : > { %2080 = vrot.lane.b32.xlu1 %v2074_v45, %s2188_s27 }
 0x48e   : > { %v1090_v47 = vpop.permute.xlu1 %1089 }
 0x48f   : > { %v1102_v49 = vsub.f32 %v2450_v38, %v1090_v47  ;;  %1264 = vst.msk [vmem:[#allocation2] sm:$0xff] %vm1260_vm6, %v1090_v47  ;;  %v440_v38 = vsub.f32 %v2313_v27, %v2321_v29 }
 0x491   : > { %v444_v58 = vmul.f32 1.442695, %v440_v38 }
 0x492   : > { %v2546_v54 = vpop.permute.xlu0 %1094 }
 0x493   : > { %v1103_v30 = vsub.f32 %v2454_v41, %v2546_v54  ;;  %1265 = vst.msk [vmem:[#allocation2 + $0x8] sm:$0xff] %vm1260_vm6, %v2546_v54  ;;  %2110 = vpow2.f32 %v444_v58 }
 0x494   : > { %2112 = vpow2.f32 %v446_v2  ;;  %v775_v2 = vmul.f32 1.442695, %v771_v11 }
 0x496   : > { %v2552_v31 = vld [vmem:[#allocation2] sm:$0xff] }
 0x497   : > { %v2555_v50 = vmax.f32 %v2552_v31, %v1397_v55 }
 0x499   : > { %1418 = vperm.xlu0 %2084, %v2555_v50  }
 0x49a   : > { %v2564_v5 = vld [vmem:[#allocation2 + $0x8] sm:$0xff] }
 0x49d   : > { %2087 = vrot.lane.b32.xlu0 %v2074_v45, %s2189_s28  ;;  %v2573_v29 = vpop.eup %2110 }
 0x49e   : > { %2091 = vset.pattern.permute.xlu0 %v2186_v23  ;;  %v473_v35 = vmul.f32 %v2573_v29, %v424_v32  ;;  %v2579_v39 = vpop.eup %2112 }
 0x49f   : > { %v474_v38 = vmul.f32 %v2579_v39, %v425_v40 }
 0x4bf   : > { %v1403_v3 = vpop.xlane.xlu0 %1402 }
 0x4c0   : > { %v1400_v6 = vpop.xlane.xlu1 %1399 }
 0x4c1   : > { %v2567_v7 = vmax.f32 %v2564_v5, %v1400_v6  ;;  %v1105_v6 = vmul.f32 1.442695, %v1102_v49 }
 0x4c3   : > { %1423 = vperm.xlu1 %2085, %v2567_v7   ;;  %v480_v25 = vpop.xlane.xlu0 %479 }
 0x4c4   : > { %v1100_v33 = vpop.permute.xlu1 %1099  ;;  %v485_v55 = vadd.f32 %v480_v25, %v473_v35 }
 0x4c5   : > { %1266 = vst.msk [vmem:[#allocation2 + $0x10] sm:$0xff] %vm1260_vm6, %v1100_v33  ;;  %v1104_v25 = vsub.f32 %v2458_v44, %v1100_v33 }
 0x4c7   : > { %1130 = vrot.lane.b32.xlu1 %v2339_v37, %s2188_s27  ;;  %v483_v27 = vpop.xlane.xlu0 %482  ;;  %v1109_v32 = vmul.f32 1.442695, %v1104_v25 }
 0x4c8   : > { %2092 = vset.pattern.permute.xlu1 %v2186_v23  ;;  %v486_v58 = vadd.f32 %v483_v27, %v474_v38  ;;  %v773_v27 = vmul.f32 1.442695, %v770_v9 }
 0x4cb   : > { %1459 = vrot.lane.b32.xlu1 %v2339_v37, %s2189_s28  ;;  %v2076_v34 = vpop.permute.xlu0 %2075  ;;  %v439_v37 = vsub.f32 %v2308_v24, %v2311_v26  ;;  %v423_v24 = vld [vmem:[#allocation3] sm:$0xff] }
 0x4cc   : > { %v2078_v45 = vunpack.i.h.bf16 %v2076_v34  ;;  %v2077_v53 = vunpack.i.l.bf16 %v2076_v34  ;;  %v2600_v8 = vld [vmem:[#allocation2 + $0x10] sm:$0xff] }
 0x4cd   : > { %v442_v62 = vmul.f32 1.442695, %v439_v37  ;;  %v2605_v28 = vmax.f32 %v2600_v8, %v1403_v3  ;;  %v1107_v37 = vmul.f32 1.442695, %v1103_v30 }
 0x4ce   : > { %v1998_v47 = vpack.c.bf16 %v2078_v45, %v2077_v53 }
 0x4cf   : > { %613 = vperm.xlu1 %2092, %v485_v55   ;;  %2114 = vpow2.f32 %v442_v62 }
 0x4d0   : > { %1999 = vmatpush3.bf16.msra.mxu0 %v1998_v47  ;;  %2116 = vpow2.f32 %v775_v2 }
 0x4d1   : > { %1915 = vmatprep.subr.mxu0 %v2184_v1  ;;  %2118 = vpow2.f32 %v1105_v6 }
 0x4d2   : > { %2120 = vpow2.f32 %v773_v27 }
 0x4d3   : > { %618 = vperm.xlu1 %2092, %v486_v58   ;;  %2122 = vpow2.f32 %v1109_v32 }
 0x4d4   : > { %2124 = vpow2.f32 %v777_v21 }
 0x4d5   : > { %2126 = vpow2.f32 %v1107_v37 }
 0x4d7   : > { %2095 = vset.pattern.permute.xlu1 %v2190_v36 }
 0x4d9   : > { %v2593_v35 = vpop.eup %2114 }
 0x4da   : > { %v2117_v26 = vpop.eup %2116  ;;  %v472_v10 = vmul.f32 %v2593_v35, %v423_v24 }
 0x4db   : > { %v785_v49 = vsel %vm426_vm4, %v2117_v26, 0.0  ;;  %v2119_v18 = vpop.eup %2118 }
 0x4dc   : > { %v2121_v33 = vpop.eup %2120  ;;  %v1114_v34 = vsel %vm426_vm4, %v2119_v18, 0.0 }
 0x4dd   : > { %v2123_v40 = vpop.eup %2122  ;;  %v782_v38 = vsel %vm426_vm4, %v2121_v33, 0.0 }
 0x4de   : > { %v1120_v15 = vsel %vm426_vm4, %v2123_v40, 0.0  ;;  %v2125_v55 = vpop.eup %2124 }
 0x4df   : > { %v788_v58 = vsel %vm426_vm4, %v2125_v55, 0.0  ;;  %v2127_v54 = vpop.eup %2126 }
 0x4f5   : > { %v477_v11 = vpop.xlane.xlu1 %476 }
 0x4f6   : > { %v484_v44 = vadd.f32 %v477_v11, %v472_v10  ;;  %v747_v11 = vsub.f32 %v2468_v52, %v2471_v56  ;;  %v746_v56 = vsub.f32 %v2462_v48, %v2465_v51 }
 0x4f7   : > { %786 = vadd.xlane.f32.xlu1 %v785_v49 }
 0x4f8   : > { %608 = vperm.xlu0 %2091, %v484_v44   ;;  %v751_v44 = vmul.f32 1.442695, %v747_v11 }
 0x4f9   : > { %v802_v9 = vpop.permute.xlu1 %801 }
 0x4fa   : > { %1916 = vmatpush3.msra.mxu0 %v802_v9 }
 0x4fb   : > { %1115 = vadd.xlane.f32.xlu1 %v1114_v34  ;;  %1918 = vmatmul.mubr.msk.f32.vlgmr.msra.gmra.mrb[6].mxu0 %vm426_vm4, %v2121_v33 }
 0x4fc   : > { %2093 = vset.pattern.permute.xlu0 %v2192_v22  ;;  %1920 = vmatprep.mubr.msk.f32.mxu0 %vm2183_vm0, %v2184_v1 }
 0x4fd   : > { %1428 = vperm.xlu0 %2093, %v2605_v28   ;;  %v2081_v12 = vpop.permute.xlu1 %2080  ;;  %2004 = vmatprep.subr.bf16.mxu0 %v2182_v0 }
 0x4fe   : > { %v2083_v45 = vunpack.i.h.bf16 %v2081_v12  ;;  %v2082_v53 = vunpack.i.l.bf16 %v2081_v12 }
 0x4ff   : > { %1121 = vadd.xlane.f32.xlu1 %v1120_v15  ;;  %1921 = vmatmul.mubr.msk.f32.gmra.mrb[8].mxu0 %vm426_vm4, %v2117_v26 }
 0x500   : > { %1923 = vmatprep.mubr.msk.f32.mxu0 %vm2183_vm0, %v2184_v1  ;;  %v2005_v3 = vpack.c.bf16 %v2083_v45, %v2082_v53  ;;  %v748_v45 = vsub.f32 %v2474_v57, %v2477_v59  ;;  %v1117_v57 = vsel %vm426_vm4, %v2127_v54, 0.0 }
 0x501   : > { %2094 = vset.pattern.permute.xlu0 %v2190_v36 }
 0x502   : > { %2006 = vmatpush3.bf16.msra.mxu0 %v2005_v3  ;;  %v753_v53 = vmul.f32 1.442695, %v748_v45 }
 0x503   : > { %1924 = vmatmul.mubr.msk.f32.gmra.mrb[10].mxu0 %vm426_vm4, %v2125_v55  ;;  %1945 = vmatprep.subr.mxu0 %v2184_v1 }
 0x504   : > { %1947 = vmatprep.mubr.msk.f32.mxu0 %vm2183_vm0, %v2184_v1 }
 0x518   : > { %v1419_v47 = vpop.permute.xlu0 %1418 }
 0x519   : > { %1593 = vst.msk [vmem:[#allocation2] sm:$0xff] %vm1589_vm7, %v1419_v47  ;;  %v1431_v2 = vsub.f32 %v2460_v46, %v1419_v47 }
 0x51b   : > { %v1434_v32 = vmul.f32 1.442695, %v1431_v2 }
 0x51c   : > { %783 = vadd.xlane.f32.xlu0 %v782_v38  ;;  %v2088_v62 = vpop.permute.xlu0 %2087 }
 0x51d   : > { %v2090_v6 = vunpack.i.h.bf16 %v2088_v62  ;;  %v2089_v25 = vunpack.i.l.bf16 %v2088_v62  ;;  %2128 = vpow2.f32 %v1434_v32 }
 0x51f   : > { %v2012_v26 = vpack.c.bf16 %v2090_v6, %v2089_v25 }
 0x520   : > { %789 = vadd.xlane.f32.xlu0 %v788_v58 }
 0x527   : > { %v2129_v30 = vpop.eup %2128 }
 0x528   : > { %v1443_v32 = vsel %vm426_vm4, %v2129_v30, 0.0 }
 0x542   : > { %v1424_v27 = vpop.permute.xlu1 %1423 }
 0x543   : > { %1594 = vst.msk [vmem:[#allocation2 + $0x8] sm:$0xff] %vm1589_vm7, %v1424_v27  ;;  %v1432_v24 = vsub.f32 %v2482_v61, %v1424_v27 }
 0x545   : > { %v1436_v41 = vmul.f32 1.442695, %v1432_v24 }
 0x546   : > { %v1131_v21 = vpop.permute.xlu1 %1130 }
 0x547   : > { %1946 = vmatpush3.msra.mxu0 %v1131_v21  ;;  %2130 = vpow2.f32 %v1436_v41 }
 0x548   : > { %1948 = vmatmul.mubr.msk.f32.vlgmr.msra.gmra.mrb[12].mxu0 %vm426_vm4, %v2119_v18  ;;  %2011 = vmatprep.subr.bf16.mxu0 %v2182_v0  ;;  %2132 = vpow2.f32 %v751_v44  ;;  %v1078_v44 = vsub.f32 %v2504_v13, %v2511_v17 }
 0x549   : > { %1950 = vmatprep.mubr.msk.f32.mxu0 %vm2183_vm0, %v2184_v1  ;;  %2013 = vmatpush3.bf16.msra.mxu0 %v2012_v26 }
 0x54a   : > { %v1460_v46 = vpop.permute.xlu1 %1459  ;;  %1975 = vmatprep.subr.mxu0 %v2184_v1 }
 0x54c   : > { %1951 = vmatmul.mubr.msk.f32.gmra.mrb[14].mxu0 %vm426_vm4, %v2127_v54 }
 0x54d   : > { %1953 = vmatprep.mubr.msk.f32.mxu0 %vm2183_vm0, %v2184_v1  ;;  %1976 = vmatpush3.msra.mxu0 %v1460_v46 }
 0x54e   : > { %v614_v61 = vpop.permute.xlu1 %613 }
 0x54f   : > { %622 = vst.msk [vmem:[#allocation3 + $0x8] sm:$0xff] %vm321_vm1, %v614_v61 }
 0x550   : > { %1954 = vmatmul.mubr.msk.f32.gmra.mrb[16].mxu0 %vm426_vm4, %v2123_v40 }
 0x551   : > { %1977 = vmatprep.mubr.msk.f32.mxu0 %vm2183_vm0, %v2184_v1  ;;  %v2646_v10 = vpop.eup %2130 }
 0x552   : > { %v619_v0 = vpop.permute.xlu1 %618  ;;  %v2657_v40 = vpop.eup %2132 }
 0x553   : > { %623 = vst.msk [vmem:[#allocation3 + $0x10] sm:$0xff] %vm321_vm1, %v619_v0 }
 0x554   : > { %1978 = vmatmul.mubr.msk.f32.vlgmr.msra.gmra.mrb[18].mxu0 %vm426_vm4, %v2129_v30 }
 0x555   : > { %1980 = vmatprep.mubr.msk.f32.mxu0 %vm2183_vm0, %v2184_v1 }
 0x556   : > { %v732_v34 = vld [vmem:[#allocation3 + $0x8] sm:$0xff] }
 0x558   : > { %1981 = vmatmul.mubr.msk.f32.gmra.mrb[20].mxu0 %vm426_vm4, %v2646_v10 }
 0x559   : > { %1983 = vmatprep.mubr.msk.f32.mxu0 %vm2183_vm0, %v2184_v1  ;;  %v780_v1 = vmul.f32 %v2657_v40, %v732_v34 }
 0x55a   : > { %v733_v58 = vld [vmem:[#allocation3 + $0x10] sm:$0xff] }
 0x577   : > { %v609_v49 = vpop.permute.xlu0 %608 }
 0x578   : > { %621 = vst.msk [vmem:[#allocation3] sm:$0xff] %vm321_vm1, %v609_v49 }
 0x57c   : > { %v1429_v18 = vpop.permute.xlu0 %1428 }
 0x57d   : > { %v1433_v9 = vsub.f32 %v2484_v63, %v1429_v18  ;;  %1595 = vst.msk [vmem:[#allocation2 + $0x10] sm:$0xff] %vm1589_vm7, %v1429_v18  ;;  %v749_v63 = vmul.f32 1.442695, %v746_v56  ;;  %v1081_v18 = vmul.f32 1.442695, %v1078_v44 }
 0x57f   : > { %v1438_v33 = vmul.f32 1.442695, %v1433_v9  ;;  %v731_v3 = vld [vmem:[#allocation3] sm:$0xff]  ;;  %v1080_v9 = vsub.f32 %v2529_v42, %v2532_v43 }
 0x581   : > { %2134 = vpow2.f32 %v1438_v33 }
 0x582   : > { %2136 = vpow2.f32 %v749_v63 }
 0x583   : > { %2138 = vpow2.f32 %v753_v53 }
 0x584   : > { %v787_v12 = vpop.xlane.xlu1 %786  ;;  %2140 = vpow2.f32 %v1081_v18 }
 0x585   : > { %v792_v15 = vadd.f32 %v787_v12, %v780_v1  ;;  %v1085_v1 = vmul.f32 1.442695, %v1080_v9 }
 0x587   : > { %945 = vperm.xlu1 %2095, %v792_v15   ;;  %2142 = vpow2.f32 %v1085_v1 }
 0x588   : > { %v1116_v21 = vpop.xlane.xlu1 %1115 }
 0x58b   : > { %v2660_v52 = vpop.eup %2134 }
 0x58c   : > { %1984 = vmatmul.mubr.msk.f32.gmra.mrb[22].mxu0 %vm426_vm4, %v2660_v52  ;;  %v2668_v55 = vpop.eup %2136  ;;  %v1122_v41 = vpop.xlane.xlu1 %1121 }
 0x58d   : > { %v779_v47 = vmul.f32 %v2668_v55, %v731_v3  ;;  %v2671_v62 = vpop.eup %2138 }
 0x58e   : > { %v781_v48 = vmul.f32 %v2671_v62, %v733_v58  ;;  %v2141_v13 = vpop.eup %2140 }
 0x591   : > { %v2143_v3 = vpop.eup %2142 }
 0x5a9   : > { %v784_v38 = vpop.xlane.xlu0 %783 }
 0x5aa   : > { %v791_v37 = vadd.f32 %v784_v38, %v779_v47  ;;  %v1079_v38 = vsub.f32 %v2514_v19, %v2517_v20  ;;  %v1446_v19 = vsel %vm426_vm4, %v2646_v10, 0.0  ;;  %v1408_v20 = vsub.f32 %v2564_v5, %v2567_v7 }
 0x5ac   : > { %940 = vperm.xlu0 %2094, %v791_v37   ;;  %v1083_v58 = vmul.f32 1.442695, %v1079_v38 }
 0x5ad   : > { %v790_v51 = vpop.xlane.xlu0 %789 }
 0x5ae   : > { %v793_v2 = vadd.f32 %v790_v51, %v781_v48  ;;  %2144 = vpow2.f32 %v1083_v58 }
 0x5b0   : > { %950 = vperm.xlu1 %2095, %v793_v2   ;;  %2097 = vset.pattern.permute.xlu0 %v2191_v60 }
 0x5b4   : > { %2096 = vset.pattern.permute.xlu1 %v2191_v60 }
 0x5b8   : > { %v2145_v48 = vpop.eup %2144 }
 0x5cb   : > { %1118 = vadd.xlane.f32.xlu0 %v1117_v57 }
 0x5ce   : > { %v2677_v59 = vpop.f32.mrb[6].mxu0 }
 0x5cf   : > { %v1919_v6 = vpop.f32.mrb[7].mxu0 }
 0x5d2   : > { %v2679_v25 = vpop.f32.mrb[8].mxu0 }
 0x5d3   : > { %v1922_v27 = vpop.f32.mrb[9].mxu0 }
 0x5d4   : > { %1444 = vadd.xlane.f32.xlu1 %v1443_v32  ;;  %v1449_v27 = vsel %vm426_vm4, %v2660_v52, 0.0 }
 0x5d6   : > { %v2682_v24 = vpop.f32.mrb[10].mxu0 }
 0x5d7   : > { %v1925_v26 = vpop.f32.mrb[11].mxu0 }
 0x606   : > { %v946_v46 = vpop.permute.xlu1 %945 }
 0x607   : > { %954 = vst.msk [vmem:[#allocation3 + $0x8] sm:$0xff] %vm931_vm5, %v946_v46 }
 0x60e   : > { %v1064_v37 = vld [vmem:[#allocation3 + $0x8] sm:$0xff] }
 0x60f   : > { %v1112_v51 = vmul.f32 %v2145_v48, %v1064_v37 }
 0x61b   : > { %v2685_v61 = vpop.f32.mrb[12].mxu0 }
 0x61c   : > { %v1949_v54 = vpop.f32.mrb[13].mxu0 }
 0x61f   : > { %v2687_v0 = vpop.f32.mrb[14].mxu0 }
 0x620   : > { %v1952_v11 = vpop.f32.mrb[15].mxu0 }
 0x623   : > { %v1220_v49 = vpop.f32.mrb[16].mxu0 }
 0x624   : > { %v1955_v30 = vpop.f32.mrb[17].mxu0 }
 0x627   : > { %v2693_v33 = vpop.f32.mrb[18].mxu0 }
 0x628   : > { %v1979_v34 = vpop.f32.mrb[19].mxu0 }
 0x62b   : > { %v941_v12 = vpop.permute.xlu0 %940  ;;  %v1544_v15 = vpop.f32.mrb[20].mxu0 }
 0x62c   : > { %953 = vst.msk [vmem:[#allocation3] sm:$0xff] %vm931_vm5, %v941_v12  ;;  %v1982_v56 = vpop.f32.mrb[21].mxu0 }
 0x62f   : > { %v951_v63 = vpop.permute.xlu1 %950 }
 0x630   : > { %955 = vst.msk [vmem:[#allocation3 + $0x10] sm:$0xff] %vm931_vm5, %v951_v63 }
 0x633   : > { %v1063_v17 = vld [vmem:[#allocation3] sm:$0xff] }
 0x634   : > { %v1111_v45 = vmul.f32 %v2141_v13, %v1063_v17 }
 0x636   : > { %v1123_v53 = vadd.f32 %v1116_v21, %v1111_v45  ;;  %v1409_v21 = vsub.f32 %v2600_v8, %v2605_v28 }
 0x637   : > { %v1065_v42 = vld [vmem:[#allocation3 + $0x10] sm:$0xff] }
 0x638   : > { %1269 = vperm.xlu1 %2096, %v1123_v53   ;;  %v1113_v43 = vmul.f32 %v2143_v3, %v1065_v42 }
 0x63a   : > { %v1125_v47 = vadd.f32 %v1122_v41, %v1113_v43  ;;  %v578_v41 = vld [vmem:[#allocation4 + $0x10] sm:$0xff] }
 0x63c   : > { %1279 = vperm.xlu1 %2096, %v1125_v47  }
 0x640   : > { %2098 = vset.pattern.permute.xlu1 %v2186_v23 }
 0x658   : > { %v1119_v2 = vpop.xlane.xlu0 %1118 }
 0x659   : > { %v1124_v57 = vadd.f32 %v1119_v2, %v1112_v51 }
 0x65b   : > { %1274 = vperm.xlu0 %2097, %v1124_v57  }
 0x65f   : > { %v2700_v6 = vpop.f32.mrb[22].mxu0  ;;  %2099 = vset.pattern.permute.xlu0 %v2190_v36 }
 0x660   : > { %1450 = vadd.xlane.f32.xlu1 %v1449_v27  ;;  %v1985_v23 = vpop.f32.mrb[23].mxu0 }
 0x661   : > { %v1445_v7 = vpop.xlane.xlu1 %1444 }
 0x671   : > { %581 = vperm.xlu1 %2098, %v2593_v35  }
 0x675   : > { %586 = vperm.xlu1 %2098, %v2573_v29   ;;  %v1412_v29 = vmul.f32 1.442695, %v1408_v20 }
 0x677   : > { %2146 = vpow2.f32 %v1412_v29 }
 0x679   : > { %591 = vperm.xlu1 %2098, %v2579_v39  }
 0x67a   : > { %1447 = vadd.xlane.f32.xlu0 %v1446_v19 }
 0x67d   : > { %2100 = vset.pattern.permute.xlu1 %v2190_v36 }
 0x67e   : > { %905 = vperm.xlu1 %2100, %v2657_v40  }
 0x681   : > { %v2147_v36 = vpop.eup %2146 }
 0x682   : > { %910 = vperm.xlu1 %2100, %v2671_v62  }
 0x686   : > { %919 = vrot.lane.b32.xlu1 %v2677_v59, %s2193_s29  ;;  %v576_v59 = vld [vmem:[#allocation4] sm:$0xff] }
 0x687   : > { %2101 = vset.pattern.permute.xlu1 %v2191_v60  ;;  %v1407_v60 = vsub.f32 %v2552_v31, %v2555_v50 }
 0x689   : > { %v1410_v5 = vmul.f32 1.442695, %v1407_v60 }
 0x68a   : > { %921 = vrot.lane.b32.xlu1 %v2679_v25, %s2193_s29  ;;  %v577_v25 = vld [vmem:[#allocation4 + $0x8] sm:$0xff] }
 0x68b   : > { %2148 = vpow2.f32 %v1410_v5 }
 0x68e   : > { %923 = vrot.lane.b32.xlu1 %v2682_v24, %s2193_s29 }
 0x690   : > { %900 = vperm.xlu0 %2099, %v2668_v55  }
 0x692   : > { %1229 = vperm.xlu1 %2101, %v2141_v13  }
 0x694   : > { %1248 = vrot.lane.b32.xlu0 %v2685_v61, %s2194_s30 }
 0x695   : > { %2103 = vset.pattern.permute.xlu0 %v2192_v22  ;;  %v2149_v10 = vpop.eup %2148 }
 0x696   : > { %1234 = vperm.xlu1 %2101, %v2145_v48  }
 0x698   : > { %1252 = vrot.lane.b32.xlu0 %v1220_v49, %s2194_s30 }
 0x69a   : > { %1239 = vperm.xlu1 %2101, %v2143_v3  }
 0x69c   : > { %1563 = vperm.xlu0 %2103, %v2147_v36  }
 0x69e   : > { %1250 = vrot.lane.b32.xlu1 %v2687_v0, %s2194_s30  ;;  %v1414_v0 = vmul.f32 1.442695, %v1409_v21 }
 0x69f   : > { %2102 = vset.pattern.permute.xlu1 %v2192_v22 }
 0x6a0   : > { %1579 = vrot.lane.b32.xlu0 %v1544_v15, %s2195_s4  ;;  %2150 = vpow2.f32 %v1414_v0 }
 0x6aa   : > { %v2151_v1 = vpop.eup %2150 }
 0x6b7   : > { %v1270_v39 = vpop.permute.xlu1 %1269 }
 0x6b8   : > { %1282 = vst.msk [vmem:[#allocation3] sm:$0xff] %vm1260_vm6, %v1270_v39 }
 0x6bb   : > { %v1280_v35 = vpop.permute.xlu1 %1279 }
 0x6bc   : > { %1284 = vst.msk [vmem:[#allocation3 + $0x10] sm:$0xff] %vm1260_vm6, %v1280_v35 }
 0x6bf   : > { %v1392_v40 = vld [vmem:[#allocation3] sm:$0xff] }
 0x6c0   : > { %v1440_v52 = vmul.f32 %v2149_v10, %v1392_v40 }
 0x6c2   : > { %v1452_v55 = vadd.f32 %v1445_v7, %v1440_v52 }
 0x6c3   : > { %v1394_v8 = vld [vmem:[#allocation3 + $0x10] sm:$0xff] }
 0x6c4   : > { %1598 = vperm.xlu1 %2102, %v1452_v55   ;;  %v1442_v56 = vmul.f32 %v2151_v1, %v1394_v8 }
 0x6da   : > { %v1275_v22 = vpop.permute.xlu0 %1274 }
 0x6db   : > { %1283 = vst.msk [vmem:[#allocation3 + $0x8] sm:$0xff] %vm1260_vm6, %v1275_v22 }
 0x6e2   : > { %v1393_v49 = vld [vmem:[#allocation3 + $0x8] sm:$0xff] }
 0x6e3   : > { %v1441_v9 = vmul.f32 %v2147_v36, %v1393_v49 }
 0x6ed   : > { %v1451_v62 = vpop.xlane.xlu1 %1450 }
 0x6f1   : > { %v582_v31 = vpop.permute.xlu1 %581 }
 0x6f2   : > { %v594_v50 = vmul.f32 %v582_v31, %v576_v59 }
 0x6f4   : > { %v597_v32 = vadd.f32 %v594_v50, %v2430_v4 }
 0x6f5   : > { %v587_v24 = vpop.permute.xlu1 %586 }
 0x6f6   : > { %600 = vst.msk [vmem:[#allocation4] sm:$0xff] %vm321_vm1, %v597_v32  ;;  %v595_v26 = vmul.f32 %v587_v24, %v577_v25 }
 0x6f8   : > { %v598_v46 = vadd.f32 %v595_v26, %v2432_v14 }
 0x6f9   : > { %v592_v61 = vpop.permute.xlu1 %591 }
 0x6fa   : > { %601 = vst.msk [vmem:[#allocation4 + $0x8] sm:$0xff] %vm321_vm1, %v598_v46  ;;  %v596_v54 = vmul.f32 %v592_v61, %v578_v41 }
 0x6fc   : > { %v599_v11 = vadd.f32 %v596_v54, %v2434_v16  ;;  %v1454_v16 = vadd.f32 %v1451_v62, %v1442_v56 }
 0x6fd   : > { %v906_v44 = vpop.permute.xlu1 %905  ;;  %v895_v53 = vld [vmem:[#allocation4] sm:$0xff] }
 0x6fe   : > { %602 = vst.msk [vmem:[#allocation4 + $0x10] sm:$0xff] %vm321_vm1, %v599_v11 }
 0x701   : > { %v911_v4 = vpop.permute.xlu1 %910  ;;  %v896_v30 = vld [vmem:[#allocation4 + $0x8] sm:$0xff] }
 0x702   : > { %v914_v34 = vmul.f32 %v906_v44, %v896_v30 }
 0x705   : > { %v920_v18 = vpop.permute.xlu1 %919  ;;  %v897_v12 = vld [vmem:[#allocation4 + $0x10] sm:$0xff] }
 0x706   : > { %v915_v13 = vmul.f32 %v911_v4, %v897_v12 }
 0x707   : > { %v1448_v28 = vpop.xlane.xlu0 %1447 }
 0x708   : > { %v1453_v14 = vadd.f32 %v1448_v28, %v1441_v9 }
 0x709   : > { %v922_v15 = vpop.permute.xlu1 %921 }
 0x70a   : > { %v929_v63 = vadd.f32 %v922_v15, %v914_v34  ;;  %1603 = vperm.xlu1 %2102, %v1453_v14  }
 0x70c   : > { %933 = vst.msk [vmem:[#allocation4 + $0x8] sm:$0xff] %vm931_vm5, %v929_v63 }
 0x70d   : > { %v924_v17 = vpop.permute.xlu1 %923 }
 0x70e   : > { %v930_v45 = vadd.f32 %v924_v17, %v915_v13  ;;  %1608 = vperm.xlu1 %2102, %v1454_v16  }
 0x70f   : > { %v901_v3 = vpop.permute.xlu0 %900 }
 0x710   : > { %934 = vst.msk [vmem:[#allocation4 + $0x10] sm:$0xff] %vm931_vm5, %v930_v45  ;;  %v913_v42 = vmul.f32 %v901_v3, %v895_v53 }
 0x711   : > { %v1230_v43 = vpop.permute.xlu1 %1229 }
 0x712   : > { %v928_v47 = vadd.f32 %v920_v18, %v913_v42  ;;  %1558 = vperm.xlu1 %2102, %v2149_v10  }
 0x713   : > { %v1249_v38 = vpop.permute.xlu0 %1248  ;;  %v1225_v57 = vld [vmem:[#allocation4 + $0x8] sm:$0xff] }
 0x714   : > { %932 = vst.msk [vmem:[#allocation4] sm:$0xff] %vm931_vm5, %v928_v47 }
 0x715   : > { %v1235_v58 = vpop.permute.xlu1 %1234 }
 0x716   : > { %1568 = vperm.xlu1 %2102, %v2151_v1   ;;  %v1243_v19 = vmul.f32 %v1235_v58, %v1225_v57 }
 0x717   : > { %v1226_v37 = vld [vmem:[#allocation4 + $0x10] sm:$0xff]  ;;  %v1253_v27 = vpop.permute.xlu0 %1252 }
 0x719   : > { %v1240_v48 = vpop.permute.xlu1 %1239 }
 0x71a   : > { %v1244_v51 = vmul.f32 %v1240_v48, %v1226_v37  ;;  %1577 = vrot.lane.b32.xlu1 %v2693_v33, %s2195_s4 }
 0x71b   : > { %v1224_v2 = vld [vmem:[#allocation4] sm:$0xff]  ;;  %v1564_v5 = vpop.permute.xlu0 %1563 }
 0x71c   : > { %v1242_v23 = vmul.f32 %v1230_v43, %v1224_v2  ;;  %v1259_v20 = vadd.f32 %v1253_v27, %v1244_v51 }
 0x71d   : > { %v1251_v29 = vpop.permute.xlu1 %1250 }
 0x71e   : > { %v1257_v36 = vadd.f32 %v1249_v38, %v1242_v23  ;;  %1263 = vst.msk [vmem:[#allocation4 + $0x10] sm:$0xff] %vm1260_vm6, %v1259_v20  ;;  %v1258_v60 = vadd.f32 %v1251_v29, %v1243_v19  ;;  %1581 = vrot.lane.b32.xlu1 %v2700_v6, %s2195_s4 }
 0x71f   : > { %v1580_v39 = vpop.permute.xlu0 %1579 }
 0x720   : > { %1261 = vst.msk [vmem:[#allocation4] sm:$0xff] %vm1260_vm6, %v1257_v36  ;;  %1262 = vst.msk [vmem:[#allocation4 + $0x8] sm:$0xff] %vm1260_vm6, %v1258_v60 }
 0x725   : > { %v1555_v24 = vld [vmem:[#allocation4 + $0x10] sm:$0xff] }
 0x727   : > { %v1554_v33 = vld [vmem:[#allocation4 + $0x8] sm:$0xff]  ;;  %v1553_v59 = vld [vmem:[#allocation4] sm:$0xff] }
 0x728   : > { %v1572_v7 = vmul.f32 %v1564_v5, %v1554_v33 }
 0x72a   : > { %v1587_v35 = vadd.f32 %v1580_v39, %v1572_v7 }
 0x72c   : > { %1591 = vst.msk [vmem:[#allocation4 + $0x8] sm:$0xff] %vm1589_vm7, %v1587_v35 }
 0x733   : > { %v1624_v21 = vld [vmem:[#allocation4 + $0x8] sm:$0xff] }
 0x743   : > { %v1599_v10 = vpop.permute.xlu1 %1598 }
 0x744   : > { %1611 = vst.msk [vmem:[#allocation3] sm:$0xff] %vm1589_vm7, %v1599_v10 }
 0x74b   : > { %v1617_v62 = vld [vmem:[#allocation3] sm:$0xff] }
 0x789   : > { %v1604_v40 = vpop.permute.xlu1 %1603 }
 0x78a   : > { %1612 = vst.msk [vmem:[#allocation3 + $0x8] sm:$0xff] %vm1589_vm7, %v1604_v40 }
 0x78d   : > { %v1609_v52 = vpop.permute.xlu1 %1608 }
 0x78e   : > { %1613 = vst.msk [vmem:[#allocation3 + $0x10] sm:$0xff] %vm1589_vm7, %v1609_v52 }
 0x791   : > { %v1618_v6 = vld [vmem:[#allocation3 + $0x8] sm:$0xff]  ;;  %v1559_v55 = vpop.permute.xlu1 %1558 }
 0x792   : > { %2152 = vrcp.f32 %v1618_v6  ;;  %v1571_v31 = vmul.f32 %v1559_v55, %v1553_v59 }
 0x793   : > { %2154 = vrcp.f32 %v1617_v62 }
 0x795   : > { %v1569_v22 = vpop.permute.xlu1 %1568  ;;  %v1619_v25 = vld [vmem:[#allocation3 + $0x10] sm:$0xff] }
 0x796   : > { %v1573_v41 = vmul.f32 %v1569_v22, %v1555_v24  ;;  %2156 = vrcp.f32 %v1619_v25 }
 0x799   : > { %v1578_v50 = vpop.permute.xlu1 %1577 }
 0x79a   : > { %v1586_v32 = vadd.f32 %v1578_v50, %v1571_v31 }
 0x79c   : > { %v2153_v26 = vpop.eup %2152  ;;  %1590 = vst.msk [vmem:[#allocation4] sm:$0xff] %vm1589_vm7, %v1586_v32 }
 0x79d   : > { %v1627_v46 = vmul.f32 %v2153_v26, %v1624_v21  ;;  %v1582_v61 = vpop.permute.xlu1 %1581  ;;  %v2155_v0 = vpop.eup %2154 }
 0x79e   : > { %v1588_v54 = vadd.f32 %v1582_v61, %v1573_v41 }
 0x79f   : > { %1631 = vst.msk [vmem:[%s293_s7 + $0x8] sm:$0xff] %vm299_vm3, %v1627_v46 }
 0x7a0   : > { %1592 = vst.msk [vmem:[#allocation4 + $0x10] sm:$0xff] %vm1589_vm7, %v1588_v54  ;;  %v2157_v4 = vpop.eup %2156 }
 0x7a3   : > { %v1623_v11 = vld [vmem:[#allocation4] sm:$0xff] }
 0x7a4   : > { %v1626_v44 = vmul.f32 %v2155_v0, %v1623_v11 }
 0x7a6   : > { %1630 = vst.msk [vmem:[%s293_s7] sm:$0xff] %vm299_vm3, %v1626_v44 }
 0x7a7   : > { %v1625_v49 = vld [vmem:[#allocation4 + $0x10] sm:$0xff] }
 0x7a8   : > { %v1628_v30 = vmul.f32 %v2157_v4, %v1625_v49 }
 0x7aa   : > { %1632 = vst.msk [vmem:[%s293_s7 + $0x10] sm:$0xff] %vm299_vm3, %v1628_v30 }
 0x7ab PF: > { %s13_s14 = sadd.s32 1, %s2180_s14   ;;  %s2776_s12 = smov %s2176_s13 }
 0x7ac   : > { %p10_p5 = scmp.ge.s32.totalorder %s13_s14, 4   ;;  %s2777_s13 = smov %s2779_s15 }
 0x7ae   :  { %12 = sbr.rel (!%p10_p5) target bundleno = 2 (0x2), region = 76 }

// kernel: joint_attention_forward.8
= control target key start
LH: loop header
LB: loop body
LE: loop exit
PB: predicated region body
PF: predicated region fallthrough
CT: control target
= control target key end

     0   :  { %vm19_vm0 = vcmask 261120   ;;  %v247_v7 = vmov 0.0   ;;  %s326_s0 = inlined_call_operand.vmem [shape: f32[32,32], index: 0, kind: input, shape index: {}]   ;;  %s327_s1 = inlined_call_operand.vmem [shape: f32[32,32], index: 1, kind: input, shape index: {}]   ;;  %s328_s2 = inlined_call_operand.vmem [shape: f32[1,32], index: 2, kind: input, shape index: {}]   ;;  %s329_s3 = inlined_call_operand.hbm [shape: f32[32,32], index: 3, kind: output, shape index: {}]  }
   0x1   :  { %v32_v0 = vld [vmem:[%s327_s1] sm:$0xff]  ;;  %v33_v1 = vld [vmem:[%s327_s1 + $0x8] sm:$0xff]  ;;  %v34_v2 = vld [vmem:[%s327_s1 + $0x10] sm:$0xff]  ;;  %21 = vst.msk [vmem:[#allocation2 + $0x8] sm:$0xff] %vm19_vm0, %v247_v7 }
   0x2   :  { %v207_v3 = vpack.c.bf16 %v33_v1, %v32_v0  ;;  %v35_v4 = vld [vmem:[%s327_s1 + $0x18] sm:$0xff]  ;;  %v28_v5 = vld [vmem:[%s326_s0] sm:$0xff]  ;;  %v30_v6 = vld [vmem:[%s326_s0 + $0x10] sm:$0xff]  ;;  %20 = vst.msk [vmem:[#allocation2] sm:$0xff] %vm19_vm0, %v247_v7 }
   0x3   :  { %22 = vst.msk [vmem:[#allocation2 + $0x10] sm:$0xff] %vm19_vm0, %v247_v7  ;;  %23 = vst.msk [vmem:[#allocation2 + $0x18] sm:$0xff] %vm19_vm0, %v247_v7  ;;  %v211_v8 = vpack.c.bf16 %v35_v4, %v34_v2  ;;  %201 = vmatprep.mubr.msk.f32.mxu0 %vm19_vm0, %v28_v5  ;;  %204 = vmatprep.mubr.msk.f32.mxu1 %vm19_vm0, %v30_v6 }
   0x4   :  { %8 = vsyncpa [#allocation4], 0  ;;  %208 = vmatprep.subr.bf16.mxu0 %v207_v3  ;;  %215 = vmatprep.subr.bf16.mxu1 %v207_v3  ;;  %v29_v9 = vld [vmem:[%s326_s0 + $0x8] sm:$0xff]  ;;  %v31_v10 = vld [vmem:[%s326_s0 + $0x18] sm:$0xff]  ;;  %s248_s28 = smov [#allocation3]  }
   0x5   :  { %210 = vmatpush3.bf16.msra.mxu0 %v207_v3  ;;  %217 = vmatpush3.bf16.msra.mxu1 %v207_v3  ;;  %v184_v23 = vld [vmem:[%s328_s2] ss:$0 sm:$0xff]  ;;  %s169_s29 = sshll.u32 %s248_s28, 4  ;;  %s170_s29 = int_to_ptr.vmem [resolvable:$true] %s169_s29 }
   0x6   :  { %212 = vmatprep.subr.bf16.mxu0 %v211_v8  ;;  %216 = vmatprep.subr.bf16.mxu1 %v211_v8  ;;  %s223_s2 = scalar_lea.vmem %s170_s29, 512  ;;  %p228_p1 = scmp.lt.s32.totalorder %s170_s29, %s170_s29 }
   0x7   :  { %p224_p0 = scmp.ne.s32.totalorder %s170_s29, %s223_s2  ;;  %p229_p2 = scmp.lt.s32.totalorder %s223_s2, %s223_s2 }
   0x8   :  { %v25_v11 = vld [vmem:[#allocation2 + $0x8] sm:$0xff] }
   0x9   :  { %214 = vmatpush3.bf16.msra.mxu0 %v211_v8  ;;  %218 = vmatpush3.bf16.msra.mxu1 %v211_v8  ;;  %v24_v13 = vld [vmem:[#allocation2] sm:$0xff]  ;;  %p230_p3 = por %p229_p2, %p228_p1 }
   0xa   :  { %v27_v12 = vld [vmem:[#allocation2 + $0x18] sm:$0xff]  ;;  %v26_v14 = vld [vmem:[#allocation2 + $0x10] sm:$0xff] }
   0xb   :  { %p231_p4 = pnand %p230_p3, %p224_p0 }
   0xc   :  { %202 = vmatmul.mubr.msk.f32.vlgmr.msra.gmra.mrb[0].mxu0 %vm19_vm0, %v29_v9  ;;  %205 = vmatmul.mubr.msk.f32.vlgmr.msra.gmra.mrb[0].mxu1 %vm19_vm0, %v31_v10 }
  0xdf   :  { %v203_v15 = vpop.f32.mrb[0].mxu0  ;;  %v206_v16 = vpop.f32.mrb[0].mxu1 }
  0xe0   :  { %v135_v17 = vadd.f32 %v203_v15, %v25_v11  ;;  %v137_v18 = vadd.f32 %v206_v16, %v27_v12  ;;  %v115_v19 = vpop.f32.mrb[1].mxu0  ;;  %v125_v20 = vpop.f32.mrb[1].mxu1 }
  0xe1   :  { %v134_v21 = vadd.f32 %v115_v19, %v24_v13  ;;  %v136_v22 = vadd.f32 %v125_v20, %v26_v14 }
  0xe2   :  { %139 = vst.msk [vmem:[#allocation2 + $0x8] sm:$0xff] %vm19_vm0, %v135_v17  ;;  %141 = vst.msk [vmem:[#allocation2 + $0x18] sm:$0xff] %vm19_vm0, %v137_v18 }
  0xe3   :  { %138 = vst.msk [vmem:[#allocation2] sm:$0xff] %vm19_vm0, %v134_v21  ;;  %140 = vst.msk [vmem:[#allocation2 + $0x10] sm:$0xff] %vm19_vm0, %v136_v22 }
  0xe9   :  { %v146_v24 = vld [vmem:[#allocation2 + $0x8] sm:$0xff]  ;;  %v148_v25 = vld [vmem:[#allocation2 + $0x18] sm:$0xff] }
  0xea   :  { %v145_v26 = vld [vmem:[#allocation2] sm:$0xff]  ;;  %v147_v27 = vld [vmem:[#allocation2 + $0x10] sm:$0xff]  ;;  %v157_v28 = vadd.f32 %v184_v23, %v146_v24  ;;  %v159_v29 = vadd.f32 %v184_v23, %v148_v25 }
  0xeb   :  { %v156_v30 = vadd.f32 %v184_v23, %v145_v26  ;;  %v158_v31 = vadd.f32 %v184_v23, %v147_v27 }
  0xec   :  { %161 = vst.msk [vmem:[#allocation3 + $0x8] sm:$0xff] %vm19_vm0, %v157_v28  ;;  %163 = vst.msk [vmem:[#allocation3 + $0x18] sm:$0xff] %vm19_vm0, %v159_v29 }
  0xed   :  { %160 = vst.msk [vmem:[#allocation3] sm:$0xff] %vm19_vm0, %v156_v30  ;;  %162 = vst.msk [vmem:[#allocation3 + $0x10] sm:$0xff] %vm19_vm0, %v158_v31 }
  0xee   :  { %234 = shalt.err (!%p231_p4)
}
  0xef   :  { %s235_s5 = scalar_lea.hbm %s329_s3, 512 }
  0xf0   :  { %p236_p5 = scmp.ne.s32.totalorder %s329_s3, %s235_s5  ;;  %p239_p6 = scmp.lt.u32.totalorder %s235_s5, %s329_s3 }
  0xf2   :  { %p241_p7 = pnand %p239_p6, %p236_p5 }
  0xf4   :  { %244 = shalt.err (!%p241_p7)
}
  0xf5   :  { %s249_s10 = smov 128   ;;  %s250_s11 = smov 8  }
  0xf6   :  { %175 = dma.vmem_to_hbm [thread:$0]  %s170_s29, 512, %s329_s3, [#allocation4], %s249_s10, %s249_s10, %s250_s11  }
  0xf7   :  { %245 = dma.done.wait [#allocation4], 512  }
  0xf8   :  { %246 = vsyncadd [#allocation4], 4294966784 }
  0xf9   :  { %179 = vsyncpa [#allocation4], 1 }

// kernel: joint_attention_forward.9
= control target key start
LH: loop header
LB: loop body
LE: loop exit
PB: predicated region body
PF: predicated region fallthrough
CT: control target
= control target key end

     0   :  { %vm19_vm0 = vcmask 261120   ;;  %v204_v6 = vmov 0.0   ;;  %s269_s0 = inlined_call_operand.vmem [shape: f32[16,32], index: 0, kind: input, shape index: {}]   ;;  %s270_s1 = inlined_call_operand.vmem [shape: f32[32,32], index: 1, kind: input, shape index: {}]   ;;  %s271_s2 = inlined_call_operand.vmem [shape: f32[1,32], index: 2, kind: input, shape index: {}]   ;;  %s272_s3 = inlined_call_operand.hbm [shape: f32[16,32], index: 3, kind: output, shape index: {}]  }
   0x1   :  { %v26_v0 = vld [vmem:[%s270_s1] sm:$0xff]  ;;  %v27_v1 = vld [vmem:[%s270_s1 + $0x8] sm:$0xff]  ;;  %v28_v2 = vld [vmem:[%s270_s1 + $0x10] sm:$0xff]  ;;  %21 = vst.msk [vmem:[#allocation2 + $0x8] sm:$0xff] %vm19_vm0, %v204_v6 }
   0x2   :  { %v168_v3 = vpack.c.bf16 %v27_v1, %v26_v0  ;;  %v29_v4 = vld [vmem:[%s270_s1 + $0x18] sm:$0xff]  ;;  %v24_v5 = vld [vmem:[%s269_s0] sm:$0xff]  ;;  %20 = vst.msk [vmem:[#allocation2] sm:$0xff] %vm19_vm0, %v204_v6 }
   0x3   :  { %v172_v7 = vpack.c.bf16 %v29_v4, %v28_v2  ;;  %165 = vmatprep.mubr.msk.f32.mxu0 %vm19_vm0, %v24_v5 }
   0x4   :  { %8 = vsyncpa [#allocation4], 0  ;;  %169 = vmatprep.subr.bf16.mxu0 %v168_v3  ;;  %v25_v8 = vld [vmem:[%s269_s0 + $0x8] sm:$0xff]  ;;  %v150_v15 = vld [vmem:[%s271_s2] ss:$0 sm:$0xff]  ;;  %s205_s25 = smov [#allocation3]  }
   0x5   :  { %171 = vmatpush3.bf16.msra.mxu0 %v168_v3  ;;  %s137_s26 = sshll.u32 %s205_s25, 4  ;;  %s138_s26 = int_to_ptr.vmem [resolvable:$true] %s137_s26 }
   0x6   :  { %173 = vmatprep.subr.bf16.mxu0 %v172_v7  ;;  %s180_s0 = scalar_lea.vmem %s138_s26, 256  ;;  %p185_p1 = scmp.lt.s32.totalorder %s138_s26, %s138_s26 }
   0x7   :  { %p181_p0 = scmp.ne.s32.totalorder %s138_s26, %s180_s0  ;;  %p186_p2 = scmp.lt.s32.totalorder %s180_s0, %s180_s0 }
   0x8   :  { %v23_v9 = vld [vmem:[#allocation2 + $0x8] sm:$0xff] }
   0x9   :  { %175 = vmatpush3.bf16.msra.mxu0 %v172_v7  ;;  %v22_v10 = vld [vmem:[#allocation2] sm:$0xff]  ;;  %p187_p3 = por %p186_p2, %p185_p1 }
   0xb   :  { %p188_p4 = pnand %p187_p3, %p181_p0 }
   0xc   :  { %166 = vmatmul.mubr.msk.f32.vlgmr.msra.gmra.mrb[0].mxu0 %vm19_vm0, %v25_v8 }
  0xdf   :  { %v167_v11 = vpop.f32.mrb[0].mxu0 }
  0xe0   :  { %v113_v12 = vadd.f32 %v167_v11, %v23_v9  ;;  %v103_v13 = vpop.f32.mrb[1].mxu0 }
  0xe1   :  { %v112_v14 = vadd.f32 %v103_v13, %v22_v10 }
  0xe2   :  { %115 = vst.msk [vmem:[#allocation2 + $0x8] sm:$0xff] %vm19_vm0, %v113_v12 }
  0xe3   :  { %114 = vst.msk [vmem:[#allocation2] sm:$0xff] %vm19_vm0, %v112_v14 }
  0xe9   :  { %v120_v16 = vld [vmem:[#allocation2 + $0x8] sm:$0xff] }
  0xea   :  { %v119_v17 = vld [vmem:[#allocation2] sm:$0xff]  ;;  %v129_v18 = vadd.f32 %v150_v15, %v120_v16 }
  0xeb   :  { %v128_v19 = vadd.f32 %v150_v15, %v119_v17 }
  0xec   :  { %131 = vst.msk [vmem:[#allocation3 + $0x8] sm:$0xff] %vm19_vm0, %v129_v18 }
  0xed   :  { %130 = vst.msk [vmem:[#allocation3] sm:$0xff] %vm19_vm0, %v128_v19 }
  0xee   :  { %191 = shalt.err (!%p188_p4)
}
  0xef   :  { %s192_s28 = scalar_lea.hbm %s272_s3, 256 }
  0xf0   :  { %p193_p5 = scmp.ne.s32.totalorder %s272_s3, %s192_s28  ;;  %p196_p6 = scmp.lt.u32.totalorder %s192_s28, %s272_s3 }
  0xf2   :  { %p198_p7 = pnand %p196_p6, %p193_p5 }
  0xf4   :  { %201 = shalt.err (!%p198_p7)
}
  0xf5   :  { %s206_s6 = smov 128   ;;  %s207_s7 = smov 8  }
  0xf6   :  { %143 = dma.vmem_to_hbm [thread:$0]  %s138_s26, 256, %s272_s3, [#allocation4], %s206_s6, %s206_s6, %s207_s7  }
  0xf7   :  { %202 = dma.done.wait [#allocation4], 256  }
  0xf8   :  { %203 = vsyncadd [#allocation4], 4294967040 }
  0xf9   :  { %147 = vsyncpa [#allocation4], 1 }

</bundles_post_ra>
